<compile_context>
chip_gen: v7x
topology: tpu7x:2x2x1
jax: 0.10.0
libtpu: 0.0.40
codegen_flags: <defaults>
</compile_context>

<pallas_src>
import jax
import jax.numpy as jnp
from jax import lax
from jax.experimental import pallas as pl
from jax.experimental.pallas import tpu as pltpu


def tacotron2_kernel(ids_ref, embw1_ref, b1_ref, whh1_ref,
                     wih2_ref, whh2_ref, b2_ref, wlin_ref, blin_ref,
                     out_ref,
                     xg1_ref, hdec_ref, h1_ref, c1_ref, h2_ref, c2_ref):
    # ids_ref:   (1,1,CHUNK*BB,1) int32   token ids for this (batch block, time chunk)
    # embw1_ref: (V, 4Hp)  bf16           embedding folded into W_ih1:  E @ W_ih1
    # b1_ref:    (1, 4Hp)  f32            encoder bias
    # whh1_ref:  (Hp, 4Hp) bf16           encoder recurrent weights
    # wih2_ref:  (Hp, 4Hp) bf16           decoder input weights
    # whh2_ref:  (Hp, 4Hp) bf16           decoder recurrent weights
    # b2_ref:    (1, 4Hp)  f32            decoder bias
    # wlin_ref:  (Hp, Op)  bf16,  blin_ref: (1, Op) f32
    # out_ref:   (CHUNK, BB, Op) f32      mel output tile (time-major, lane dense)
    # xg1_ref:   (CHUNK, BB, 4Hp) f32     scratch: precomputed encoder input gates
    # hdec_ref:  (CHUNK, BB, Hp)  f32     scratch: decoder hiddens of this chunk
    # h1/c1/h2/c2_ref: (BB, Hp) f32       persistent scratch: state carried across chunks
    t_chunk = pl.program_id(1)
    CHUNK, BB, Hp = hdec_ref.shape
    G = 4 * Hp
    M = CHUNK * BB
    V = embw1_ref.shape[0]
    f32 = jnp.float32
    bf16 = jnp.bfloat16

    # ---- reset carried LSTM state at the start of every sequence (time chunk 0) ----
    @pl.when(t_chunk == 0)
    def _():
        h1_ref[...] = jnp.zeros_like(h1_ref)
        c1_ref[...] = jnp.zeros_like(c1_ref)
        h2_ref[...] = jnp.zeros_like(h2_ref)
        c2_ref[...] = jnp.zeros_like(c2_ref)

    # ---- in-kernel embedding gather fused with the batched encoder input projection:
    #      x_t @ W_ih1 == onehot(id_t) @ (E @ W_ih1); bias b1 folded in as well. ----
    ids = ids_ref[...].reshape(M, 1)
    onehot = jnp.where(ids == lax.broadcasted_iota(jnp.int32, (M, V), 1),
                       1.0, 0.0).astype(bf16)
    xg1 = jnp.dot(onehot, embw1_ref[...], preferred_element_type=f32) + b1_ref[...]
    xg1_ref[...] = xg1.reshape(CHUNK, BB, G)

    whh1 = whh1_ref[...]
    wih2 = wih2_ref[...]
    whh2 = whh2_ref[...]
    b2 = jnp.broadcast_to(b2_ref[...], (BB, G))   # hoisted: one broadcast per chunk

    def sigmoid(x):                                # single EUP tanh, no VPU divide
        return 0.5 * jnp.tanh(0.5 * x) + 0.5

    def gates_to_hc(gates, c):
        # Each gate block starts at a 128-aligned lane offset (Hp % 128 == 0), so every
        # slice is a full vreg lane block. NOTE: for tiny H (< 128) this pads the gate
        # width 4x; the padding is free only when H is already a multiple of 128
        # (production hidden sizes 256/512).
        i_g = sigmoid(gates[:, 0:Hp])
        f_g = sigmoid(gates[:, Hp:2 * Hp])
        g_g = jnp.tanh(gates[:, 2 * Hp:3 * Hp])
        o_g = sigmoid(gates[:, 3 * Hp:4 * Hp])
        c_new = f_g * c + i_g * g_g
        return o_g * jnp.tanh(c_new), c_new

    # ---- fused encoder + decoder recurrence: only recurrent matmuls remain inside ----
    def step(t, carry):
        h1, c1, h2, c2 = carry
        g1 = xg1_ref[t] + jnp.dot(h1.astype(bf16), whh1, preferred_element_type=f32)
        h1, c1 = gates_to_hc(g1, c1)
        g2 = (jnp.dot(h1.astype(bf16), wih2, preferred_element_type=f32)
              + jnp.dot(h2.astype(bf16), whh2, preferred_element_type=f32) + b2)
        h2, c2 = gates_to_hc(g2, c2)
        hdec_ref[t] = h2
        return h1, c1, h2, c2

    carry0 = (h1_ref[...], c1_ref[...], h2_ref[...], c2_ref[...])
    # Bounded unroll per chunk (the demo chunk is 4; use unroll=4..8 for production
    # chunk sizes of 64-128 instead of whole-sequence unrolling).
    h1, c1, h2, c2 = lax.fori_loop(0, CHUNK, step, carry0, unroll=True)
    h1_ref[...] = h1
    c1_ref[...] = c1
    h2_ref[...] = h2
    c2_ref[...] = c2

    # ---- per-chunk final linear projection + one lane-dense slab store ----
    hs = hdec_ref[...].reshape(M, Hp).astype(bf16)
    y = jnp.dot(hs, wlin_ref[...], preferred_element_type=f32) + blin_ref[...]
    out_ref[...] = y.reshape(CHUNK, BB, -1).astype(out_ref.dtype)


def _round_up(x, m):
    return ((x + m - 1) // m) * m


def _pad_gate_weight(w, H, Hp):
    # w: (H, 4H), gate order [i|f|g|o] -> (Hp, 4Hp) with each gate block starting at a
    # 128-aligned lane offset; padded entries stay exactly zero.
    out = jnp.zeros((Hp, 4 * Hp), jnp.float32)
    for g in range(4):
        out = out.at[:H, g * Hp:g * Hp + H].set(w[:, g * H:(g + 1) * H])
    return out


def _pad_gate_bias(b, H, Hp):
    out = jnp.zeros((1, 4 * Hp), jnp.float32)
    for g in range(4):
        out = out.at[:, g * Hp:g * Hp + H].set(b[:, g * H:(g + 1) * H])
    return out


# Time-chunk length: kept small so the demo (T=8) exercises the cross-chunk state carry;
# use 64-128 for production T (~1000) and budget VMEM (bf16 weights + one chunk of
# xg1/hdec + double-buffered ids/out tiles) against the 32 MiB limit set below (v7x).
TIME_CHUNK = 4
BATCH_BLOCK = 8    # sublane-aligned batch rows per "parallel" grid block


def tacotron2_forward(x_ids, params):
    B, T = x_ids.shape
    V, H = params["embedding"].shape
    O = params["w_lin"].shape[1]

    BB = BATCH_BLOCK
    Bp = max(BB, _round_up(B, BB))
    NBB = Bp // BB                      # "parallel" axis: >1 block splits across TCs
    Hp = _round_up(H, 128)              # 128-aligned gate lanes
    Op = _round_up(O, 128)              # lane-dense output
    CHUNK = TIME_CHUNK
    Tp = _round_up(T, CHUNK)
    NTC = Tp // CHUNK
    M = CHUNK * BB

    f32 = jnp.float32
    bf16 = jnp.bfloat16

    # ---- pad / fold parameters (trace-time; padded lanes stay exactly zero) ----
    emb_p = jnp.zeros((V, Hp), f32).at[:, :H].set(params["embedding"])
    wih1_p = _pad_gate_weight(params["w_ih1"], H, Hp)
    embw1 = jnp.dot(emb_p, wih1_p).astype(bf16)                    # E @ W_ih1  (V, 4Hp)
    whh1_b = _pad_gate_weight(params["w_hh1"], H, Hp).astype(bf16)
    b1_p = _pad_gate_bias(params["b1"], H, Hp)
    wih2_b = _pad_gate_weight(params["w_ih2"], H, Hp).astype(bf16)
    whh2_b = _pad_gate_weight(params["w_hh2"], H, Hp).astype(bf16)
    b2_p = _pad_gate_bias(params["b2"], H, Hp)
    wlin_b = jnp.zeros((Hp, Op), f32).at[:H, :O].set(params["w_lin"]).astype(bf16)
    blin_p = jnp.zeros((1, Op), f32).at[:, :O].set(params["b_lin"])

    # ---- token ids laid out per (batch block, time chunk); rows are (t_local, b) ----
    ids_full = jnp.zeros((Bp, Tp), jnp.int32).at[:B, :T].set(x_ids.astype(jnp.int32))
    ids_arr = (ids_full.reshape(NBB, BB, NTC, CHUNK)
               .transpose(0, 2, 3, 1)
               .reshape(NBB, NTC, M, 1))

    G = 4 * Hp
    flops = (2 * Tp * Bp * V * G            # fused embedding + encoder input projection
             + 2 * Tp * Bp * Hp * G         # encoder recurrent matmul
             + 2 * Tp * Bp * 2 * Hp * G     # decoder matmuls (input + recurrent)
             + 2 * Tp * Bp * Hp * Op)       # final linear
    transcendentals = 2 * Tp * Bp * 5 * Hp  # 5 tanh per LSTM cell per element
    bytes_accessed = (ids_arr.size * 4
                      + 2 * (embw1.size + whh1_b.size + wih2_b.size
                             + whh2_b.size + wlin_b.size)
                      + 4 * (b1_p.size + b2_p.size + blin_p.size)
                      + 4 * Tp * Bp * Op)

    out_tbo = pl.pallas_call(
        tacotron2_kernel,
        out_shape=jax.ShapeDtypeStruct((Tp, Bp, Op), f32),
        grid_spec=pltpu.PrefetchScalarGridSpec(
            num_scalar_prefetch=0,
            grid=(NBB, NTC),
            in_specs=[
                pl.BlockSpec((1, 1, M, 1), lambda bb, tc: (bb, tc, 0, 0)),   # ids
                pl.BlockSpec((V, G), lambda bb, tc: (0, 0)),                 # E @ W_ih1
                pl.BlockSpec((1, G), lambda bb, tc: (0, 0)),                 # b1
                pl.BlockSpec((Hp, G), lambda bb, tc: (0, 0)),                # W_hh1
                pl.BlockSpec((Hp, G), lambda bb, tc: (0, 0)),                # W_ih2
                pl.BlockSpec((Hp, G), lambda bb, tc: (0, 0)),                # W_hh2
                pl.BlockSpec((1, G), lambda bb, tc: (0, 0)),                 # b2
                pl.BlockSpec((Hp, Op), lambda bb, tc: (0, 0)),               # W_lin
                pl.BlockSpec((1, Op), lambda bb, tc: (0, 0)),                # b_lin
            ],
            out_specs=pl.BlockSpec((CHUNK, BB, Op), lambda bb, tc: (tc, bb, 0)),
            scratch_shapes=[
                pltpu.VMEM((CHUNK, BB, G), f32),    # xg1: precomputed input gates
                pltpu.VMEM((CHUNK, BB, Hp), f32),   # decoder hiddens of this chunk
                pltpu.VMEM((BB, Hp), f32),          # h1 (carried across time chunks)
                pltpu.VMEM((BB, Hp), f32),          # c1
                pltpu.VMEM((BB, Hp), f32),          # h2
                pltpu.VMEM((BB, Hp), f32),          # c2
            ]),
        compiler_params=pltpu.CompilerParams(
            dimension_semantics=("parallel", "arbitrary"),
            vmem_limit_bytes=32 * 1024 * 1024),
        cost_estimate=pl.CostEstimate(flops=flops,
                                      transcendentals=transcendentals,
                                      bytes_accessed=bytes_accessed),
    )(ids_arr, embw1, b1_p, whh1_b, wih2_b, whh2_b, b2_p, wlin_b, blin_p)

    # (Tp, Bp, Op) time-major -> (B, T, O): drop time / batch / lane padding.
    return jnp.transpose(out_tbo, (1, 0, 2))[:B, :T, :O]


def reference_forward(x_ids, params):
    """Pure-JAX f32 reference mirroring torch semantics (for correctness check)."""
    x = jnp.take(params["embedding"], x_ids, axis=0)           # (B, T, H)
    B, T, H = x.shape

    def run_lstm(seq, wih, whh, b):
        def step(carry, x_t):
            h, c = carry
            gates = x_t @ wih + h @ whh + b[0]
            i_g = jax.nn.sigmoid(gates[:, 0:H])
            f_g = jax.nn.sigmoid(gates[:, H:2 * H])
            g_g = jnp.tanh(gates[:, 2 * H:3 * H])
            o_g = jax.nn.sigmoid(gates[:, 3 * H:4 * H])
            c_new = f_g * c + i_g * g_g
            h_new = o_g * jnp.tanh(c_new)
            return (h_new, c_new), h_new
        h0 = jnp.zeros((B, H), jnp.float32)
        c0 = jnp.zeros((B, H), jnp.float32)
        _, hs = lax.scan(step, (h0, c0), jnp.transpose(seq, (1, 0, 2)))
        return jnp.transpose(hs, (1, 0, 2))

    enc = run_lstm(x, params["w_ih1"], params["w_hh1"], params["b1"])
    dec = run_lstm(enc, params["w_ih2"], params["w_hh2"], params["b2"])
    return dec @ params["w_lin"] + params["b_lin"][0]


def make_params(vocab, hidden, output_dim, key):
    ks = jax.random.split(key, 10)
    s = 0.1
    f32 = jnp.float32
    return {
        "embedding": (jax.random.normal(ks[0], (vocab, hidden)) * s).astype(f32),
        "w_ih1": (jax.random.normal(ks[1], (hidden, 4 * hidden)) * s).astype(f32),
        "w_hh1": (jax.random.normal(ks[2], (hidden, 4 * hidden)) * s).astype(f32),
        "b1":    (jax.random.normal(ks[3], (1, 4 * hidden)) * s).astype(f32),
        "w_ih2": (jax.random.normal(ks[4], (hidden, 4 * hidden)) * s).astype(f32),
        "w_hh2": (jax.random.normal(ks[5], (hidden, 4 * hidden)) * s).astype(f32),
        "b2":    (jax.random.normal(ks[6], (1, 4 * hidden)) * s).astype(f32),
        "w_lin": (jax.random.normal(ks[7], (hidden, output_dim)) * s).astype(f32),
        "b_lin": (jax.random.normal(ks[8], (1, output_dim)) * s).astype(f32),
    }


if __name__ == "__main__":
    VOCAB = 20       # input_dim
    HIDDEN = 32      # hidden_dim
    OUTPUT = 16      # output_dim
    B, T = 2, 8

    key = jax.random.PRNGKey(0)
    k_param, k_ids = jax.random.split(key)
    params = make_params(VOCAB, HIDDEN, OUTPUT, k_param)
    x_ids = jax.random.randint(k_ids, (B, T), 0, VOCAB)        # token ids

    out = jax.jit(tacotron2_forward)(x_ids, params)
    out = jax.block_until_ready(out)
    assert out.shape == (B, T, OUTPUT), out.shape

    ref = reference_forward(x_ids, params)
    # bf16 MXU operands (f32 accumulation) vs. the pure-f32 reference -> looser tolerance
    # than the previous all-f32 kernel (per review: re-validated after the bf16 switch).
    assert jnp.allclose(out, ref, rtol=1e-2, atol=1e-2), float(jnp.max(jnp.abs(out - ref)))

    print("KERNEL_OK")
</pallas_src>

<mosaic_0001>
module attributes {stable_mosaic.version = 11 : i64} {
  func.func @tacotron2_kernel(%arg0: i32, %arg1: i32, %arg2: memref<1x1x32x1xi32, #tpu.memory_space<vmem>>, %arg3: memref<20x512xbf16, #tpu.memory_space<vmem>>, %arg4: memref<1x512xf32, #tpu.memory_space<vmem>>, %arg5: memref<128x512xbf16, #tpu.memory_space<vmem>>, %arg6: memref<128x512xbf16, #tpu.memory_space<vmem>>, %arg7: memref<128x512xbf16, #tpu.memory_space<vmem>>, %arg8: memref<1x512xf32, #tpu.memory_space<vmem>>, %arg9: memref<128x128xbf16, #tpu.memory_space<vmem>>, %arg10: memref<1x128xf32, #tpu.memory_space<vmem>>, %arg11: memref<4x8x128xf32, #tpu.memory_space<vmem>>, %arg12: memref<4x8x512xf32, #tpu.memory_space<vmem>>, %arg13: memref<4x8x128xf32, #tpu.memory_space<vmem>>, %arg14: memref<8x128xf32, #tpu.memory_space<vmem>>, %arg15: memref<8x128xf32, #tpu.memory_space<vmem>>, %arg16: memref<8x128xf32, #tpu.memory_space<vmem>>, %arg17: memref<8x128xf32, #tpu.memory_space<vmem>>) attributes {dimension_semantics = [#tpu.dimension_semantics<parallel>, #tpu.dimension_semantics<arbitrary>], iteration_bounds = array<i64: 1, 2>, scalar_prefetch = 0 : i64, scratch_operands = 6 : i64, tpu.core_type = #tpu.core_type<tc>, window_params = [{transform_indices = @transform_0, window_bounds = array<i64: 1, 1, 32, 1>}, {pipeline_mode = #tpu.pipeline_mode<synchronous>, transform_indices = @transform_1, window_bounds = array<i64: 20, 512>}, {pipeline_mode = #tpu.pipeline_mode<synchronous>, transform_indices = @transform_2, window_bounds = array<i64: 1, 512>}, {pipeline_mode = #tpu.pipeline_mode<synchronous>, transform_indices = @transform_3, window_bounds = array<i64: 128, 512>}, {pipeline_mode = #tpu.pipeline_mode<synchronous>, transform_indices = @transform_4, window_bounds = array<i64: 128, 512>}, {pipeline_mode = #tpu.pipeline_mode<synchronous>, transform_indices = @transform_5, window_bounds = array<i64: 128, 512>}, {pipeline_mode = #tpu.pipeline_mode<synchronous>, transform_indices = @transform_6, window_bounds = array<i64: 1, 512>}, {pipeline_mode = #tpu.pipeline_mode<synchronous>, transform_indices = @transform_7, window_bounds = array<i64: 128, 128>}, {pipeline_mode = #tpu.pipeline_mode<synchronous>, transform_indices = @transform_8, window_bounds = array<i64: 1, 128>}, {transform_indices = @transform_9, window_bounds = array<i64: 4, 8, 128>}]} {
    %c0_i32 = arith.constant 0 : i32
    %0 = arith.cmpi eq, %arg1, %c0_i32 : i32
    %1 = arith.extui %0 : i1 to i32
    %c0_i32_0 = arith.constant 0 : i32
    %2 = arith.cmpi ne, %1, %c0_i32_0 : i32
    scf.if %2 {
      %cst_149 = arith.constant 0.000000e+00 : f32
      %355 = vector.broadcast %cst_149 : f32 to vector<8x128xf32>
      %c0_150 = arith.constant 0 : index
      %c0_151 = arith.constant 0 : index
      %356 = vector.load %arg14[%c0_150, %c0_151] : memref<8x128xf32, #tpu.memory_space<vmem>>, vector<8x128xf32>
      tpu.vector_store %arg14[%c0_150, %c0_151], %355 {strides = array<i32>} : memref<8x128xf32, #tpu.memory_space<vmem>>, vector<8x128xf32>,
      %cst_152 = arith.constant 0.000000e+00 : f32
      %357 = vector.broadcast %cst_152 : f32 to vector<8x128xf32>
      %c0_153 = arith.constant 0 : index
      %c0_154 = arith.constant 0 : index
      %358 = vector.load %arg15[%c0_153, %c0_154] : memref<8x128xf32, #tpu.memory_space<vmem>>, vector<8x128xf32>
      tpu.vector_store %arg15[%c0_153, %c0_154], %357 {strides = array<i32>} : memref<8x128xf32, #tpu.memory_space<vmem>>, vector<8x128xf32>,
      %cst_155 = arith.constant 0.000000e+00 : f32
      %359 = vector.broadcast %cst_155 : f32 to vector<8x128xf32>
      %c0_156 = arith.constant 0 : index
      %c0_157 = arith.constant 0 : index
      %360 = vector.load %arg16[%c0_156, %c0_157] : memref<8x128xf32, #tpu.memory_space<vmem>>, vector<8x128xf32>
      tpu.vector_store %arg16[%c0_156, %c0_157], %359 {strides = array<i32>} : memref<8x128xf32, #tpu.memory_space<vmem>>, vector<8x128xf32>,
      %cst_158 = arith.constant 0.000000e+00 : f32
      %361 = vector.broadcast %cst_158 : f32 to vector<8x128xf32>
      %c0_159 = arith.constant 0 : index
      %c0_160 = arith.constant 0 : index
      %362 = vector.load %arg17[%c0_159, %c0_160] : memref<8x128xf32, #tpu.memory_space<vmem>>, vector<8x128xf32>
      tpu.vector_store %arg17[%c0_159, %c0_160], %361 {strides = array<i32>} : memref<8x128xf32, #tpu.memory_space<vmem>>, vector<8x128xf32>,
    } else {
    }
    %c0 = arith.constant 0 : index
    %c0_1 = arith.constant 0 : index
    %c0_2 = arith.constant 0 : index
    %c0_3 = arith.constant 0 : index
    %3 = vector.load %arg2[%c0, %c0_1, %c0_2, %c0_3] : memref<1x1x32x1xi32, #tpu.memory_space<vmem>>, vector<1x1x32x1xi32>
    %4 = vector.shape_cast %3 : vector<1x1x32x1xi32> to vector<32x1xi32>
    %5 = tpu.iota {dimensions = array<i32: 1>} : vector<32x20xi32>
    %6 = vector.broadcast %4 : vector<32x1xi32> to vector<32x20xi32>
    %7 = arith.cmpi eq, %6, %5 : vector<32x20xi32>
    %cst = arith.constant 1.000000e+00 : f32
    %cst_4 = arith.constant 0.000000e+00 : f32
    %8 = vector.broadcast %cst : f32 to vector<32x20xf32>
    %9 = vector.broadcast %cst_4 : f32 to vector<32x20xf32>
    %10 = arith.select %7, %8, %9 : vector<32x20xi1>, vector<32x20xf32>
    %11 = arith.truncf %10 : vector<32x20xf32> to vector<32x20xbf16>
    %c0_5 = arith.constant 0 : index
    %c0_6 = arith.constant 0 : index
    %12 = vector.load %arg3[%c0_5, %c0_6] : memref<20x512xbf16, #tpu.memory_space<vmem>>, vector<20x512xbf16>
    %cst_7 = arith.constant dense<0.000000e+00> : vector<32x512xf32>
    %13 = tpu.matmul %11, %12, %cst_7 {dimension_numbers = #tpu.dot_dimension_numbers<[1], [0], [0], [1], [0, 0, 1, 1], [], []>} : vector<32x20xbf16>, vector<20x512xbf16>, vector<32x512xf32> -> vector<32x512xf32>
    %c0_8 = arith.constant 0 : index
    %c0_9 = arith.constant 0 : index
    %14 = vector.load %arg4[%c0_8, %c0_9] : memref<1x512xf32, #tpu.memory_space<vmem>>, vector<1x512xf32>
    %15 = vector.broadcast %14 : vector<1x512xf32> to vector<32x512xf32>
    %16 = arith.addf %13, %15 : vector<32x512xf32>
    %17 = vector.shape_cast %16 : vector<32x512xf32> to vector<4x8x512xf32>
    %c0_10 = arith.constant 0 : index
    %c0_11 = arith.constant 0 : index
    %c0_12 = arith.constant 0 : index
    %18 = vector.load %arg12[%c0_10, %c0_11, %c0_12] : memref<4x8x512xf32, #tpu.memory_space<vmem>>, vector<4x8x512xf32>
    tpu.vector_store %arg12[%c0_10, %c0_11, %c0_12], %17 {strides = array<i32>} : memref<4x8x512xf32, #tpu.memory_space<vmem>>, vector<4x8x512xf32>,
    %c0_13 = arith.constant 0 : index
    %c0_14 = arith.constant 0 : index
    %19 = vector.load %arg5[%c0_13, %c0_14] : memref<128x512xbf16, #tpu.memory_space<vmem>>, vector<128x512xbf16>
    %c0_15 = arith.constant 0 : index
    %c0_16 = arith.constant 0 : index
    %20 = vector.load %arg6[%c0_15, %c0_16] : memref<128x512xbf16, #tpu.memory_space<vmem>>, vector<128x512xbf16>
    %c0_17 = arith.constant 0 : index
    %c0_18 = arith.constant 0 : index
    %21 = vector.load %arg7[%c0_17, %c0_18] : memref<128x512xbf16, #tpu.memory_space<vmem>>, vector<128x512xbf16>
    %c0_19 = arith.constant 0 : index
    %c0_20 = arith.constant 0 : index
    %22 = vector.load %arg8[%c0_19, %c0_20] : memref<1x512xf32, #tpu.memory_space<vmem>>, vector<1x512xf32>
    %23 = vector.shape_cast %22 : vector<1x512xf32> to vector<1x512xf32>
    %24 = vector.broadcast %23 : vector<1x512xf32> to vector<8x512xf32>
    %c0_21 = arith.constant 0 : index
    %c0_22 = arith.constant 0 : index
    %25 = vector.load %arg14[%c0_21, %c0_22] : memref<8x128xf32, #tpu.memory_space<vmem>>, vector<8x128xf32>
    %c0_23 = arith.constant 0 : index
    %c0_24 = arith.constant 0 : index
    %26 = vector.load %arg15[%c0_23, %c0_24] : memref<8x128xf32, #tpu.memory_space<vmem>>, vector<8x128xf32>
    %c0_25 = arith.constant 0 : index
    %c0_26 = arith.constant 0 : index
    %27 = vector.load %arg16[%c0_25, %c0_26] : memref<8x128xf32, #tpu.memory_space<vmem>>, vector<8x128xf32>
    %c0_27 = arith.constant 0 : index
    %c0_28 = arith.constant 0 : index
    %28 = vector.load %arg17[%c0_27, %c0_28] : memref<8x128xf32, #tpu.memory_space<vmem>>, vector<8x128xf32>
    %c0_i32_29 = arith.constant 0 : i32
    %29 = arith.index_cast %c0_i32_29 : i32 to index
    %c0_30 = arith.constant 0 : index
    %c0_31 = arith.constant 0 : index
    %30 = vector.load %arg12[%29, %c0_30, %c0_31] : memref<4x8x512xf32, #tpu.memory_space<vmem>>, vector<1x8x512xf32>
    %31 = vector.shape_cast %30 : vector<1x8x512xf32> to vector<8x512xf32>
    %32 = arith.truncf %25 : vector<8x128xf32> to vector<8x128xbf16>
    %cst_32 = arith.constant dense<0.000000e+00> : vector<8x512xf32>
    %33 = tpu.matmul %32, %19, %cst_32 {dimension_numbers = #tpu.dot_dimension_numbers<[1], [0], [0], [1], [0, 0, 1, 1], [], []>} : vector<8x128xbf16>, vector<128x512xbf16>, vector<8x512xf32> -> vector<8x512xf32>
    %34 = arith.addf %31, %33 : vector<8x512xf32>
    %35 = vector.extract_strided_slice %34 {offsets = [0, 0], sizes = [8, 128], strides = [1, 1]} : vector<8x512xf32> to vector<8x128xf32>
    %cst_33 = arith.constant 5.000000e-01 : f32
    %36 = vector.broadcast %cst_33 : f32 to vector<8x128xf32>
    %37 = arith.mulf %36, %35 : vector<8x128xf32>
    %38 = math.tanh %37 : vector<8x128xf32>
    %cst_34 = arith.constant 5.000000e-01 : f32
    %39 = vector.broadcast %cst_34 : f32 to vector<8x128xf32>
    %40 = arith.mulf %39, %38 : vector<8x128xf32>
    %cst_35 = arith.constant 5.000000e-01 : f32
    %41 = vector.broadcast %cst_35 : f32 to vector<8x128xf32>
    %42 = arith.addf %40, %41 : vector<8x128xf32>
    %43 = vector.extract_strided_slice %34 {offsets = [0, 128], sizes = [8, 128], strides = [1, 1]} : vector<8x512xf32> to vector<8x128xf32>
    %cst_36 = arith.constant 5.000000e-01 : f32
    %44 = vector.broadcast %cst_36 : f32 to vector<8x128xf32>
    %45 = arith.mulf %44, %43 : vector<8x128xf32>
    %46 = math.tanh %45 : vector<8x128xf32>
    %cst_37 = arith.constant 5.000000e-01 : f32
    %47 = vector.broadcast %cst_37 : f32 to vector<8x128xf32>
    %48 = arith.mulf %47, %46 : vector<8x128xf32>
    %cst_38 = arith.constant 5.000000e-01 : f32
    %49 = vector.broadcast %cst_38 : f32 to vector<8x128xf32>
    %50 = arith.addf %48, %49 : vector<8x128xf32>
    %51 = vector.extract_strided_slice %34 {offsets = [0, 256], sizes = [8, 128], strides = [1, 1]} : vector<8x512xf32> to vector<8x128xf32>
    %52 = math.tanh %51 : vector<8x128xf32>
    %53 = vector.extract_strided_slice %34 {offsets = [0, 384], sizes = [8, 128], strides = [1, 1]} : vector<8x512xf32> to vector<8x128xf32>
    %cst_39 = arith.constant 5.000000e-01 : f32
    %54 = vector.broadcast %cst_39 : f32 to vector<8x128xf32>
    %55 = arith.mulf %54, %53 : vector<8x128xf32>
    %56 = math.tanh %55 : vector<8x128xf32>
    %cst_40 = arith.constant 5.000000e-01 : f32
    %57 = vector.broadcast %cst_40 : f32 to vector<8x128xf32>
    %58 = arith.mulf %57, %56 : vector<8x128xf32>
    %cst_41 = arith.constant 5.000000e-01 : f32
    %59 = vector.broadcast %cst_41 : f32 to vector<8x128xf32>
    %60 = arith.addf %58, %59 : vector<8x128xf32>
    %61 = arith.mulf %50, %26 : vector<8x128xf32>
    %62 = arith.mulf %42, %52 : vector<8x128xf32>
    %63 = arith.addf %61, %62 : vector<8x128xf32>
    %64 = math.tanh %63 : vector<8x128xf32>
    %65 = arith.mulf %60, %64 : vector<8x128xf32>
    %66 = arith.truncf %65 : vector<8x128xf32> to vector<8x128xbf16>
    %cst_42 = arith.constant dense<0.000000e+00> : vector<8x512xf32>
    %67 = tpu.matmul %66, %20, %cst_42 {dimension_numbers = #tpu.dot_dimension_numbers<[1], [0], [0], [1], [0, 0, 1, 1], [], []>} : vector<8x128xbf16>, vector<128x512xbf16>, vector<8x512xf32> -> vector<8x512xf32>
    %68 = arith.truncf %27 : vector<8x128xf32> to vector<8x128xbf16>
    %cst_43 = arith.constant dense<0.000000e+00> : vector<8x512xf32>
    %69 = tpu.matmul %68, %21, %cst_43 {dimension_numbers = #tpu.dot_dimension_numbers<[1], [0], [0], [1], [0, 0, 1, 1], [], []>} : vector<8x128xbf16>, vector<128x512xbf16>, vector<8x512xf32> -> vector<8x512xf32>
    %70 = arith.addf %67, %69 : vector<8x512xf32>
    %71 = arith.addf %70, %24 : vector<8x512xf32>
    %72 = vector.extract_strided_slice %71 {offsets = [0, 0], sizes = [8, 128], strides = [1, 1]} : vector<8x512xf32> to vector<8x128xf32>
    %cst_44 = arith.constant 5.000000e-01 : f32
    %73 = vector.broadcast %cst_44 : f32 to vector<8x128xf32>
    %74 = arith.mulf %73, %72 : vector<8x128xf32>
    %75 = math.tanh %74 : vector<8x128xf32>
    %cst_45 = arith.constant 5.000000e-01 : f32
    %76 = vector.broadcast %cst_45 : f32 to vector<8x128xf32>
    %77 = arith.mulf %76, %75 : vector<8x128xf32>
    %cst_46 = arith.constant 5.000000e-01 : f32
    %78 = vector.broadcast %cst_46 : f32 to vector<8x128xf32>
    %79 = arith.addf %77, %78 : vector<8x128xf32>
    %80 = vector.extract_strided_slice %71 {offsets = [0, 128], sizes = [8, 128], strides = [1, 1]} : vector<8x512xf32> to vector<8x128xf32>
    %cst_47 = arith.constant 5.000000e-01 : f32
    %81 = vector.broadcast %cst_47 : f32 to vector<8x128xf32>
    %82 = arith.mulf %81, %80 : vector<8x128xf32>
    %83 = math.tanh %82 : vector<8x128xf32>
    %cst_48 = arith.constant 5.000000e-01 : f32
    %84 = vector.broadcast %cst_48 : f32 to vector<8x128xf32>
    %85 = arith.mulf %84, %83 : vector<8x128xf32>
    %cst_49 = arith.constant 5.000000e-01 : f32
    %86 = vector.broadcast %cst_49 : f32 to vector<8x128xf32>
    %87 = arith.addf %85, %86 : vector<8x128xf32>
    %88 = vector.extract_strided_slice %71 {offsets = [0, 256], sizes = [8, 128], strides = [1, 1]} : vector<8x512xf32> to vector<8x128xf32>
    %89 = math.tanh %88 : vector<8x128xf32>
    %90 = vector.extract_strided_slice %71 {offsets = [0, 384], sizes = [8, 128], strides = [1, 1]} : vector<8x512xf32> to vector<8x128xf32>
    %cst_50 = arith.constant 5.000000e-01 : f32
    %91 = vector.broadcast %cst_50 : f32 to vector<8x128xf32>
    %92 = arith.mulf %91, %90 : vector<8x128xf32>
    %93 = math.tanh %92 : vector<8x128xf32>
    %cst_51 = arith.constant 5.000000e-01 : f32
    %94 = vector.broadcast %cst_51 : f32 to vector<8x128xf32>
    %95 = arith.mulf %94, %93 : vector<8x128xf32>
    %cst_52 = arith.constant 5.000000e-01 : f32
    %96 = vector.broadcast %cst_52 : f32 to vector<8x128xf32>
    %97 = arith.addf %95, %96 : vector<8x128xf32>
    %98 = arith.mulf %87, %28 : vector<8x128xf32>
    %99 = arith.mulf %79, %89 : vector<8x128xf32>
    %100 = arith.addf %98, %99 : vector<8x128xf32>
    %101 = math.tanh %100 : vector<8x128xf32>
    %102 = arith.mulf %97, %101 : vector<8x128xf32>
    %103 = arith.index_cast %c0_i32_29 : i32 to index
    %c0_53 = arith.constant 0 : index
    %c0_54 = arith.constant 0 : index
    %104 = vector.load %arg13[%103, %c0_53, %c0_54] : memref<4x8x128xf32, #tpu.memory_space<vmem>>, vector<1x8x128xf32>
    %105 = vector.shape_cast %104 : vector<1x8x128xf32> to vector<8x128xf32>
    %106 = vector.shape_cast %102 : vector<8x128xf32> to vector<1x8x128xf32>
    tpu.vector_store %arg13[%103, %c0_53, %c0_54], %106 {strides = array<i32>} : memref<4x8x128xf32, #tpu.memory_space<vmem>>, vector<1x8x128xf32>,
    %c1_i32 = arith.constant 1 : i32
    %107 = arith.index_cast %c1_i32 : i32 to index
    %c0_55 = arith.constant 0 : index
    %c0_56 = arith.constant 0 : index
    %108 = vector.load %arg12[%107, %c0_55, %c0_56] : memref<4x8x512xf32, #tpu.memory_space<vmem>>, vector<1x8x512xf32>
    %109 = vector.shape_cast %108 : vector<1x8x512xf32> to vector<8x512xf32>
    %110 = arith.truncf %65 : vector<8x128xf32> to vector<8x128xbf16>
    %cst_57 = arith.constant dense<0.000000e+00> : vector<8x512xf32>
    %111 = tpu.matmul %110, %19, %cst_57 {dimension_numbers = #tpu.dot_dimension_numbers<[1], [0], [0], [1], [0, 0, 1, 1], [], []>} : vector<8x128xbf16>, vector<128x512xbf16>, vector<8x512xf32> -> vector<8x512xf32>
    %112 = arith.addf %109, %111 : vector<8x512xf32>
    %113 = vector.extract_strided_slice %112 {offsets = [0, 0], sizes = [8, 128], strides = [1, 1]} : vector<8x512xf32> to vector<8x128xf32>
    %cst_58 = arith.constant 5.000000e-01 : f32
    %114 = vector.broadcast %cst_58 : f32 to vector<8x128xf32>
    %115 = arith.mulf %114, %113 : vector<8x128xf32>
    %116 = math.tanh %115 : vector<8x128xf32>
    %cst_59 = arith.constant 5.000000e-01 : f32
    %117 = vector.broadcast %cst_59 : f32 to vector<8x128xf32>
    %118 = arith.mulf %117, %116 : vector<8x128xf32>
    %cst_60 = arith.constant 5.000000e-01 : f32
    %119 = vector.broadcast %cst_60 : f32 to vector<8x128xf32>
    %120 = arith.addf %118, %119 : vector<8x128xf32>
    %121 = vector.extract_strided_slice %112 {offsets = [0, 128], sizes = [8, 128], strides = [1, 1]} : vector<8x512xf32> to vector<8x128xf32>
    %cst_61 = arith.constant 5.000000e-01 : f32
    %122 = vector.broadcast %cst_61 : f32 to vector<8x128xf32>
    %123 = arith.mulf %122, %121 : vector<8x128xf32>
    %124 = math.tanh %123 : vector<8x128xf32>
    %cst_62 = arith.constant 5.000000e-01 : f32
    %125 = vector.broadcast %cst_62 : f32 to vector<8x128xf32>
    %126 = arith.mulf %125, %124 : vector<8x128xf32>
    %cst_63 = arith.constant 5.000000e-01 : f32
    %127 = vector.broadcast %cst_63 : f32 to vector<8x128xf32>
    %128 = arith.addf %126, %127 : vector<8x128xf32>
    %129 = vector.extract_strided_slice %112 {offsets = [0, 256], sizes = [8, 128], strides = [1, 1]} : vector<8x512xf32> to vector<8x128xf32>
    %130 = math.tanh %129 : vector<8x128xf32>
    %131 = vector.extract_strided_slice %112 {offsets = [0, 384], sizes = [8, 128], strides = [1, 1]} : vector<8x512xf32> to vector<8x128xf32>
    %cst_64 = arith.constant 5.000000e-01 : f32
    %132 = vector.broadcast %cst_64 : f32 to vector<8x128xf32>
    %133 = arith.mulf %132, %131 : vector<8x128xf32>
    %134 = math.tanh %133 : vector<8x128xf32>
    %cst_65 = arith.constant 5.000000e-01 : f32
    %135 = vector.broadcast %cst_65 : f32 to vector<8x128xf32>
    %136 = arith.mulf %135, %134 : vector<8x128xf32>
    %cst_66 = arith.constant 5.000000e-01 : f32
    %137 = vector.broadcast %cst_66 : f32 to vector<8x128xf32>
    %138 = arith.addf %136, %137 : vector<8x128xf32>
    %139 = arith.mulf %128, %63 : vector<8x128xf32>
    %140 = arith.mulf %120, %130 : vector<8x128xf32>
    %141 = arith.addf %139, %140 : vector<8x128xf32>
    %142 = math.tanh %141 : vector<8x128xf32>
    %143 = arith.mulf %138, %142 : vector<8x128xf32>
    %144 = arith.truncf %143 : vector<8x128xf32> to vector<8x128xbf16>
    %cst_67 = arith.constant dense<0.000000e+00> : vector<8x512xf32>
    %145 = tpu.matmul %144, %20, %cst_67 {dimension_numbers = #tpu.dot_dimension_numbers<[1], [0], [0], [1], [0, 0, 1, 1], [], []>} : vector<8x128xbf16>, vector<128x512xbf16>, vector<8x512xf32> -> vector<8x512xf32>
    %146 = arith.truncf %102 : vector<8x128xf32> to vector<8x128xbf16>
    %cst_68 = arith.constant dense<0.000000e+00> : vector<8x512xf32>
    %147 = tpu.matmul %146, %21, %cst_68 {dimension_numbers = #tpu.dot_dimension_numbers<[1], [0], [0], [1], [0, 0, 1, 1], [], []>} : vector<8x128xbf16>, vector<128x512xbf16>, vector<8x512xf32> -> vector<8x512xf32>
    %148 = arith.addf %145, %147 : vector<8x512xf32>
    %149 = arith.addf %148, %24 : vector<8x512xf32>
    %150 = vector.extract_strided_slice %149 {offsets = [0, 0], sizes = [8, 128], strides = [1, 1]} : vector<8x512xf32> to vector<8x128xf32>
    %cst_69 = arith.constant 5.000000e-01 : f32
    %151 = vector.broadcast %cst_69 : f32 to vector<8x128xf32>
    %152 = arith.mulf %151, %150 : vector<8x128xf32>
    %153 = math.tanh %152 : vector<8x128xf32>
    %cst_70 = arith.constant 5.000000e-01 : f32
    %154 = vector.broadcast %cst_70 : f32 to vector<8x128xf32>
    %155 = arith.mulf %154, %153 : vector<8x128xf32>
    %cst_71 = arith.constant 5.000000e-01 : f32
    %156 = vector.broadcast %cst_71 : f32 to vector<8x128xf32>
    %157 = arith.addf %155, %156 : vector<8x128xf32>
    %158 = vector.extract_strided_slice %149 {offsets = [0, 128], sizes = [8, 128], strides = [1, 1]} : vector<8x512xf32> to vector<8x128xf32>
    %cst_72 = arith.constant 5.000000e-01 : f32
    %159 = vector.broadcast %cst_72 : f32 to vector<8x128xf32>
    %160 = arith.mulf %159, %158 : vector<8x128xf32>
    %161 = math.tanh %160 : vector<8x128xf32>
    %cst_73 = arith.constant 5.000000e-01 : f32
    %162 = vector.broadcast %cst_73 : f32 to vector<8x128xf32>
    %163 = arith.mulf %162, %161 : vector<8x128xf32>
    %cst_74 = arith.constant 5.000000e-01 : f32
    %164 = vector.broadcast %cst_74 : f32 to vector<8x128xf32>
    %165 = arith.addf %163, %164 : vector<8x128xf32>
    %166 = vector.extract_strided_slice %149 {offsets = [0, 256], sizes = [8, 128], strides = [1, 1]} : vector<8x512xf32> to vector<8x128xf32>
    %167 = math.tanh %166 : vector<8x128xf32>
    %168 = vector.extract_strided_slice %149 {offsets = [0, 384], sizes = [8, 128], strides = [1, 1]} : vector<8x512xf32> to vector<8x128xf32>
    %cst_75 = arith.constant 5.000000e-01 : f32
    %169 = vector.broadcast %cst_75 : f32 to vector<8x128xf32>
    %170 = arith.mulf %169, %168 : vector<8x128xf32>
    %171 = math.tanh %170 : vector<8x128xf32>
    %cst_76 = arith.constant 5.000000e-01 : f32
    %172 = vector.broadcast %cst_76 : f32 to vector<8x128xf32>
    %173 = arith.mulf %172, %171 : vector<8x128xf32>
    %cst_77 = arith.constant 5.000000e-01 : f32
    %174 = vector.broadcast %cst_77 : f32 to vector<8x128xf32>
    %175 = arith.addf %173, %174 : vector<8x128xf32>
    %176 = arith.mulf %165, %100 : vector<8x128xf32>
    %177 = arith.mulf %157, %167 : vector<8x128xf32>
    %178 = arith.addf %176, %177 : vector<8x128xf32>
    %179 = math.tanh %178 : vector<8x128xf32>
    %180 = arith.mulf %175, %179 : vector<8x128xf32>
    %181 = arith.index_cast %c1_i32 : i32 to index
    %c0_78 = arith.constant 0 : index
    %c0_79 = arith.constant 0 : index
    %182 = vector.load %arg13[%181, %c0_78, %c0_79] : memref<4x8x128xf32, #tpu.memory_space<vmem>>, vector<1x8x128xf32>
    %183 = vector.shape_cast %182 : vector<1x8x128xf32> to vector<8x128xf32>
    %184 = vector.shape_cast %180 : vector<8x128xf32> to vector<1x8x128xf32>
    tpu.vector_store %arg13[%181, %c0_78, %c0_79], %184 {strides = array<i32>} : memref<4x8x128xf32, #tpu.memory_space<vmem>>, vector<1x8x128xf32>,
    %c2_i32 = arith.constant 2 : i32
    %185 = arith.index_cast %c2_i32 : i32 to index
    %c0_80 = arith.constant 0 : index
    %c0_81 = arith.constant 0 : index
    %186 = vector.load %arg12[%185, %c0_80, %c0_81] : memref<4x8x512xf32, #tpu.memory_space<vmem>>, vector<1x8x512xf32>
    %187 = vector.shape_cast %186 : vector<1x8x512xf32> to vector<8x512xf32>
    %188 = arith.truncf %143 : vector<8x128xf32> to vector<8x128xbf16>
    %cst_82 = arith.constant dense<0.000000e+00> : vector<8x512xf32>
    %189 = tpu.matmul %188, %19, %cst_82 {dimension_numbers = #tpu.dot_dimension_numbers<[1], [0], [0], [1], [0, 0, 1, 1], [], []>} : vector<8x128xbf16>, vector<128x512xbf16>, vector<8x512xf32> -> vector<8x512xf32>
    %190 = arith.addf %187, %189 : vector<8x512xf32>
    %191 = vector.extract_strided_slice %190 {offsets = [0, 0], sizes = [8, 128], strides = [1, 1]} : vector<8x512xf32> to vector<8x128xf32>
    %cst_83 = arith.constant 5.000000e-01 : f32
    %192 = vector.broadcast %cst_83 : f32 to vector<8x128xf32>
    %193 = arith.mulf %192, %191 : vector<8x128xf32>
    %194 = math.tanh %193 : vector<8x128xf32>
    %cst_84 = arith.constant 5.000000e-01 : f32
    %195 = vector.broadcast %cst_84 : f32 to vector<8x128xf32>
    %196 = arith.mulf %195, %194 : vector<8x128xf32>
    %cst_85 = arith.constant 5.000000e-01 : f32
    %197 = vector.broadcast %cst_85 : f32 to vector<8x128xf32>
    %198 = arith.addf %196, %197 : vector<8x128xf32>
    %199 = vector.extract_strided_slice %190 {offsets = [0, 128], sizes = [8, 128], strides = [1, 1]} : vector<8x512xf32> to vector<8x128xf32>
    %cst_86 = arith.constant 5.000000e-01 : f32
    %200 = vector.broadcast %cst_86 : f32 to vector<8x128xf32>
    %201 = arith.mulf %200, %199 : vector<8x128xf32>
    %202 = math.tanh %201 : vector<8x128xf32>
    %cst_87 = arith.constant 5.000000e-01 : f32
    %203 = vector.broadcast %cst_87 : f32 to vector<8x128xf32>
    %204 = arith.mulf %203, %202 : vector<8x128xf32>
    %cst_88 = arith.constant 5.000000e-01 : f32
    %205 = vector.broadcast %cst_88 : f32 to vector<8x128xf32>
    %206 = arith.addf %204, %205 : vector<8x128xf32>
    %207 = vector.extract_strided_slice %190 {offsets = [0, 256], sizes = [8, 128], strides = [1, 1]} : vector<8x512xf32> to vector<8x128xf32>
    %208 = math.tanh %207 : vector<8x128xf32>
    %209 = vector.extract_strided_slice %190 {offsets = [0, 384], sizes = [8, 128], strides = [1, 1]} : vector<8x512xf32> to vector<8x128xf32>
    %cst_89 = arith.constant 5.000000e-01 : f32
    %210 = vector.broadcast %cst_89 : f32 to vector<8x128xf32>
    %211 = arith.mulf %210, %209 : vector<8x128xf32>
    %212 = math.tanh %211 : vector<8x128xf32>
    %cst_90 = arith.constant 5.000000e-01 : f32
    %213 = vector.broadcast %cst_90 : f32 to vector<8x128xf32>
    %214 = arith.mulf %213, %212 : vector<8x128xf32>
    %cst_91 = arith.constant 5.000000e-01 : f32
    %215 = vector.broadcast %cst_91 : f32 to vector<8x128xf32>
    %216 = arith.addf %214, %215 : vector<8x128xf32>
    %217 = arith.mulf %206, %141 : vector<8x128xf32>
    %218 = arith.mulf %198, %208 : vector<8x128xf32>
    %219 = arith.addf %217, %218 : vector<8x128xf32>
    %220 = math.tanh %219 : vector<8x128xf32>
    %221 = arith.mulf %216, %220 : vector<8x128xf32>
    %222 = arith.truncf %221 : vector<8x128xf32> to vector<8x128xbf16>
    %cst_92 = arith.constant dense<0.000000e+00> : vector<8x512xf32>
    %223 = tpu.matmul %222, %20, %cst_92 {dimension_numbers = #tpu.dot_dimension_numbers<[1], [0], [0], [1], [0, 0, 1, 1], [], []>} : vector<8x128xbf16>, vector<128x512xbf16>, vector<8x512xf32> -> vector<8x512xf32>
    %224 = arith.truncf %180 : vector<8x128xf32> to vector<8x128xbf16>
    %cst_93 = arith.constant dense<0.000000e+00> : vector<8x512xf32>
    %225 = tpu.matmul %224, %21, %cst_93 {dimension_numbers = #tpu.dot_dimension_numbers<[1], [0], [0], [1], [0, 0, 1, 1], [], []>} : vector<8x128xbf16>, vector<128x512xbf16>, vector<8x512xf32> -> vector<8x512xf32>
    %226 = arith.addf %223, %225 : vector<8x512xf32>
    %227 = arith.addf %226, %24 : vector<8x512xf32>
    %228 = vector.extract_strided_slice %227 {offsets = [0, 0], sizes = [8, 128], strides = [1, 1]} : vector<8x512xf32> to vector<8x128xf32>
    %cst_94 = arith.constant 5.000000e-01 : f32
    %229 = vector.broadcast %cst_94 : f32 to vector<8x128xf32>
    %230 = arith.mulf %229, %228 : vector<8x128xf32>
    %231 = math.tanh %230 : vector<8x128xf32>
    %cst_95 = arith.constant 5.000000e-01 : f32
    %232 = vector.broadcast %cst_95 : f32 to vector<8x128xf32>
    %233 = arith.mulf %232, %231 : vector<8x128xf32>
    %cst_96 = arith.constant 5.000000e-01 : f32
    %234 = vector.broadcast %cst_96 : f32 to vector<8x128xf32>
    %235 = arith.addf %233, %234 : vector<8x128xf32>
    %236 = vector.extract_strided_slice %227 {offsets = [0, 128], sizes = [8, 128], strides = [1, 1]} : vector<8x512xf32> to vector<8x128xf32>
    %cst_97 = arith.constant 5.000000e-01 : f32
    %237 = vector.broadcast %cst_97 : f32 to vector<8x128xf32>
    %238 = arith.mulf %237, %236 : vector<8x128xf32>
    %239 = math.tanh %238 : vector<8x128xf32>
    %cst_98 = arith.constant 5.000000e-01 : f32
    %240 = vector.broadcast %cst_98 : f32 to vector<8x128xf32>
    %241 = arith.mulf %240, %239 : vector<8x128xf32>
    %cst_99 = arith.constant 5.000000e-01 : f32
    %242 = vector.broadcast %cst_99 : f32 to vector<8x128xf32>
    %243 = arith.addf %241, %242 : vector<8x128xf32>
    %244 = vector.extract_strided_slice %227 {offsets = [0, 256], sizes = [8, 128], strides = [1, 1]} : vector<8x512xf32> to vector<8x128xf32>
    %245 = math.tanh %244 : vector<8x128xf32>
    %246 = vector.extract_strided_slice %227 {offsets = [0, 384], sizes = [8, 128], strides = [1, 1]} : vector<8x512xf32> to vector<8x128xf32>
    %cst_100 = arith.constant 5.000000e-01 : f32
    %247 = vector.broadcast %cst_100 : f32 to vector<8x128xf32>
    %248 = arith.mulf %247, %246 : vector<8x128xf32>
    %249 = math.tanh %248 : vector<8x128xf32>
    %cst_101 = arith.constant 5.000000e-01 : f32
    %250 = vector.broadcast %cst_101 : f32 to vector<8x128xf32>
    %251 = arith.mulf %250, %249 : vector<8x128xf32>
    %cst_102 = arith.constant 5.000000e-01 : f32
    %252 = vector.broadcast %cst_102 : f32 to vector<8x128xf32>
    %253 = arith.addf %251, %252 : vector<8x128xf32>
    %254 = arith.mulf %243, %178 : vector<8x128xf32>
    %255 = arith.mulf %235, %245 : vector<8x128xf32>
    %256 = arith.addf %254, %255 : vector<8x128xf32>
    %257 = math.tanh %256 : vector<8x128xf32>
    %258 = arith.mulf %253, %257 : vector<8x128xf32>
    %259 = arith.index_cast %c2_i32 : i32 to index
    %c0_103 = arith.constant 0 : index
    %c0_104 = arith.constant 0 : index
    %260 = vector.load %arg13[%259, %c0_103, %c0_104] : memref<4x8x128xf32, #tpu.memory_space<vmem>>, vector<1x8x128xf32>
    %261 = vector.shape_cast %260 : vector<1x8x128xf32> to vector<8x128xf32>
    %262 = vector.shape_cast %258 : vector<8x128xf32> to vector<1x8x128xf32>
    tpu.vector_store %arg13[%259, %c0_103, %c0_104], %262 {strides = array<i32>} : memref<4x8x128xf32, #tpu.memory_space<vmem>>, vector<1x8x128xf32>,
    %c3_i32 = arith.constant 3 : i32
    %263 = arith.index_cast %c3_i32 : i32 to index
    %c0_105 = arith.constant 0 : index
    %c0_106 = arith.constant 0 : index
    %264 = vector.load %arg12[%263, %c0_105, %c0_106] : memref<4x8x512xf32, #tpu.memory_space<vmem>>, vector<1x8x512xf32>
    %265 = vector.shape_cast %264 : vector<1x8x512xf32> to vector<8x512xf32>
    %266 = arith.truncf %221 : vector<8x128xf32> to vector<8x128xbf16>
    %cst_107 = arith.constant dense<0.000000e+00> : vector<8x512xf32>
    %267 = tpu.matmul %266, %19, %cst_107 {dimension_numbers = #tpu.dot_dimension_numbers<[1], [0], [0], [1], [0, 0, 1, 1], [], []>} : vector<8x128xbf16>, vector<128x512xbf16>, vector<8x512xf32> -> vector<8x512xf32>
    %268 = arith.addf %265, %267 : vector<8x512xf32>
    %269 = vector.extract_strided_slice %268 {offsets = [0, 0], sizes = [8, 128], strides = [1, 1]} : vector<8x512xf32> to vector<8x128xf32>
    %cst_108 = arith.constant 5.000000e-01 : f32
    %270 = vector.broadcast %cst_108 : f32 to vector<8x128xf32>
    %271 = arith.mulf %270, %269 : vector<8x128xf32>
    %272 = math.tanh %271 : vector<8x128xf32>
    %cst_109 = arith.constant 5.000000e-01 : f32
    %273 = vector.broadcast %cst_109 : f32 to vector<8x128xf32>
    %274 = arith.mulf %273, %272 : vector<8x128xf32>
    %cst_110 = arith.constant 5.000000e-01 : f32
    %275 = vector.broadcast %cst_110 : f32 to vector<8x128xf32>
    %276 = arith.addf %274, %275 : vector<8x128xf32>
    %277 = vector.extract_strided_slice %268 {offsets = [0, 128], sizes = [8, 128], strides = [1, 1]} : vector<8x512xf32> to vector<8x128xf32>
    %cst_111 = arith.constant 5.000000e-01 : f32
    %278 = vector.broadcast %cst_111 : f32 to vector<8x128xf32>
    %279 = arith.mulf %278, %277 : vector<8x128xf32>
    %280 = math.tanh %279 : vector<8x128xf32>
    %cst_112 = arith.constant 5.000000e-01 : f32
    %281 = vector.broadcast %cst_112 : f32 to vector<8x128xf32>
    %282 = arith.mulf %281, %280 : vector<8x128xf32>
    %cst_113 = arith.constant 5.000000e-01 : f32
    %283 = vector.broadcast %cst_113 : f32 to vector<8x128xf32>
    %284 = arith.addf %282, %283 : vector<8x128xf32>
    %285 = vector.extract_strided_slice %268 {offsets = [0, 256], sizes = [8, 128], strides = [1, 1]} : vector<8x512xf32> to vector<8x128xf32>
    %286 = math.tanh %285 : vector<8x128xf32>
    %287 = vector.extract_strided_slice %268 {offsets = [0, 384], sizes = [8, 128], strides = [1, 1]} : vector<8x512xf32> to vector<8x128xf32>
    %cst_114 = arith.constant 5.000000e-01 : f32
    %288 = vector.broadcast %cst_114 : f32 to vector<8x128xf32>
    %289 = arith.mulf %288, %287 : vector<8x128xf32>
    %290 = math.tanh %289 : vector<8x128xf32>
    %cst_115 = arith.constant 5.000000e-01 : f32
    %291 = vector.broadcast %cst_115 : f32 to vector<8x128xf32>
    %292 = arith.mulf %291, %290 : vector<8x128xf32>
    %cst_116 = arith.constant 5.000000e-01 : f32
    %293 = vector.broadcast %cst_116 : f32 to vector<8x128xf32>
    %294 = arith.addf %292, %293 : vector<8x128xf32>
    %295 = arith.mulf %284, %219 : vector<8x128xf32>
    %296 = arith.mulf %276, %286 : vector<8x128xf32>
    %297 = arith.addf %295, %296 : vector<8x128xf32>
    %298 = math.tanh %297 : vector<8x128xf32>
    %299 = arith.mulf %294, %298 : vector<8x128xf32>
    %300 = arith.truncf %299 : vector<8x128xf32> to vector<8x128xbf16>
    %cst_117 = arith.constant dense<0.000000e+00> : vector<8x512xf32>
    %301 = tpu.matmul %300, %20, %cst_117 {dimension_numbers = #tpu.dot_dimension_numbers<[1], [0], [0], [1], [0, 0, 1, 1], [], []>} : vector<8x128xbf16>, vector<128x512xbf16>, vector<8x512xf32> -> vector<8x512xf32>
    %302 = arith.truncf %258 : vector<8x128xf32> to vector<8x128xbf16>
    %cst_118 = arith.constant dense<0.000000e+00> : vector<8x512xf32>
    %303 = tpu.matmul %302, %21, %cst_118 {dimension_numbers = #tpu.dot_dimension_numbers<[1], [0], [0], [1], [0, 0, 1, 1], [], []>} : vector<8x128xbf16>, vector<128x512xbf16>, vector<8x512xf32> -> vector<8x512xf32>
    %304 = arith.addf %301, %303 : vector<8x512xf32>
    %305 = arith.addf %304, %24 : vector<8x512xf32>
    %306 = vector.extract_strided_slice %305 {offsets = [0, 0], sizes = [8, 128], strides = [1, 1]} : vector<8x512xf32> to vector<8x128xf32>
    %cst_119 = arith.constant 5.000000e-01 : f32
    %307 = vector.broadcast %cst_119 : f32 to vector<8x128xf32>
    %308 = arith.mulf %307, %306 : vector<8x128xf32>
    %309 = math.tanh %308 : vector<8x128xf32>
    %cst_120 = arith.constant 5.000000e-01 : f32
    %310 = vector.broadcast %cst_120 : f32 to vector<8x128xf32>
    %311 = arith.mulf %310, %309 : vector<8x128xf32>
    %cst_121 = arith.constant 5.000000e-01 : f32
    %312 = vector.broadcast %cst_121 : f32 to vector<8x128xf32>
    %313 = arith.addf %311, %312 : vector<8x128xf32>
    %314 = vector.extract_strided_slice %305 {offsets = [0, 128], sizes = [8, 128], strides = [1, 1]} : vector<8x512xf32> to vector<8x128xf32>
    %cst_122 = arith.constant 5.000000e-01 : f32
    %315 = vector.broadcast %cst_122 : f32 to vector<8x128xf32>
    %316 = arith.mulf %315, %314 : vector<8x128xf32>
    %317 = math.tanh %316 : vector<8x128xf32>
    %cst_123 = arith.constant 5.000000e-01 : f32
    %318 = vector.broadcast %cst_123 : f32 to vector<8x128xf32>
    %319 = arith.mulf %318, %317 : vector<8x128xf32>
    %cst_124 = arith.constant 5.000000e-01 : f32
    %320 = vector.broadcast %cst_124 : f32 to vector<8x128xf32>
    %321 = arith.addf %319, %320 : vector<8x128xf32>
    %322 = vector.extract_strided_slice %305 {offsets = [0, 256], sizes = [8, 128], strides = [1, 1]} : vector<8x512xf32> to vector<8x128xf32>
    %323 = math.tanh %322 : vector<8x128xf32>
    %324 = vector.extract_strided_slice %305 {offsets = [0, 384], sizes = [8, 128], strides = [1, 1]} : vector<8x512xf32> to vector<8x128xf32>
    %cst_125 = arith.constant 5.000000e-01 : f32
    %325 = vector.broadcast %cst_125 : f32 to vector<8x128xf32>
    %326 = arith.mulf %325, %324 : vector<8x128xf32>
    %327 = math.tanh %326 : vector<8x128xf32>
    %cst_126 = arith.constant 5.000000e-01 : f32
    %328 = vector.broadcast %cst_126 : f32 to vector<8x128xf32>
    %329 = arith.mulf %328, %327 : vector<8x128xf32>
    %cst_127 = arith.constant 5.000000e-01 : f32
    %330 = vector.broadcast %cst_127 : f32 to vector<8x128xf32>
    %331 = arith.addf %329, %330 : vector<8x128xf32>
    %332 = arith.mulf %321, %256 : vector<8x128xf32>
    %333 = arith.mulf %313, %323 : vector<8x128xf32>
    %334 = arith.addf %332, %333 : vector<8x128xf32>
    %335 = math.tanh %334 : vector<8x128xf32>
    %336 = arith.mulf %331, %335 : vector<8x128xf32>
    %337 = arith.index_cast %c3_i32 : i32 to index
    %c0_128 = arith.constant 0 : index
    %c0_129 = arith.constant 0 : index
    %338 = vector.load %arg13[%337, %c0_128, %c0_129] : memref<4x8x128xf32, #tpu.memory_space<vmem>>, vector<1x8x128xf32>
    %339 = vector.shape_cast %338 : vector<1x8x128xf32> to vector<8x128xf32>
    %340 = vector.shape_cast %336 : vector<8x128xf32> to vector<1x8x128xf32>
    tpu.vector_store %arg13[%337, %c0_128, %c0_129], %340 {strides = array<i32>} : memref<4x8x128xf32, #tpu.memory_space<vmem>>, vector<1x8x128xf32>,
    %c4_i32 = arith.constant 4 : i32
    %c0_130 = arith.constant 0 : index
    %c0_131 = arith.constant 0 : index
    %341 = vector.load %arg14[%c0_130, %c0_131] : memref<8x128xf32, #tpu.memory_space<vmem>>, vector<8x128xf32>
    tpu.vector_store %arg14[%c0_130, %c0_131], %299 {strides = array<i32>} : memref<8x128xf32, #tpu.memory_space<vmem>>, vector<8x128xf32>,
    %c0_132 = arith.constant 0 : index
    %c0_133 = arith.constant 0 : index
    %342 = vector.load %arg15[%c0_132, %c0_133] : memref<8x128xf32, #tpu.memory_space<vmem>>, vector<8x128xf32>
    tpu.vector_store %arg15[%c0_132, %c0_133], %297 {strides = array<i32>} : memref<8x128xf32, #tpu.memory_space<vmem>>, vector<8x128xf32>,
    %c0_134 = arith.constant 0 : index
    %c0_135 = arith.constant 0 : index
    %343 = vector.load %arg16[%c0_134, %c0_135] : memref<8x128xf32, #tpu.memory_space<vmem>>, vector<8x128xf32>
    tpu.vector_store %arg16[%c0_134, %c0_135], %336 {strides = array<i32>} : memref<8x128xf32, #tpu.memory_space<vmem>>, vector<8x128xf32>,
    %c0_136 = arith.constant 0 : index
    %c0_137 = arith.constant 0 : index
    %344 = vector.load %arg17[%c0_136, %c0_137] : memref<8x128xf32, #tpu.memory_space<vmem>>, vector<8x128xf32>
    tpu.vector_store %arg17[%c0_136, %c0_137], %334 {strides = array<i32>} : memref<8x128xf32, #tpu.memory_space<vmem>>, vector<8x128xf32>,
    %c0_138 = arith.constant 0 : index
    %c0_139 = arith.constant 0 : index
    %c0_140 = arith.constant 0 : index
    %345 = vector.load %arg13[%c0_138, %c0_139, %c0_140] : memref<4x8x128xf32, #tpu.memory_space<vmem>>, vector<4x8x128xf32>
    %346 = vector.shape_cast %345 : vector<4x8x128xf32> to vector<32x128xf32>
    %347 = arith.truncf %346 : vector<32x128xf32> to vector<32x128xbf16>
    %c0_141 = arith.constant 0 : index
    %c0_142 = arith.constant 0 : index
    %348 = vector.load %arg9[%c0_141, %c0_142] : memref<128x128xbf16, #tpu.memory_space<vmem>>, vector<128x128xbf16>
    %cst_143 = arith.constant dense<0.000000e+00> : vector<32x128xf32>
    %349 = tpu.matmul %347, %348, %cst_143 {dimension_numbers = #tpu.dot_dimension_numbers<[1], [0], [0], [1], [0, 0, 1, 1], [], []>} : vector<32x128xbf16>, vector<128x128xbf16>, vector<32x128xf32> -> vector<32x128xf32>
    %c0_144 = arith.constant 0 : index
    %c0_145 = arith.constant 0 : index
    %350 = vector.load %arg10[%c0_144, %c0_145] : memref<1x128xf32, #tpu.memory_space<vmem>>, vector<1x128xf32>
    %351 = vector.broadcast %350 : vector<1x128xf32> to vector<32x128xf32>
    %352 = arith.addf %349, %351 : vector<32x128xf32>
    %353 = vector.shape_cast %352 : vector<32x128xf32> to vector<4x8x128xf32>
    %c0_146 = arith.constant 0 : index
    %c0_147 = arith.constant 0 : index
    %c0_148 = arith.constant 0 : index
    %354 = vector.load %arg11[%c0_146, %c0_147, %c0_148] : memref<4x8x128xf32, #tpu.memory_space<vmem>>, vector<4x8x128xf32>
    tpu.vector_store %arg11[%c0_146, %c0_147, %c0_148], %353 {strides = array<i32>} : memref<4x8x128xf32, #tpu.memory_space<vmem>>, vector<4x8x128xf32>,
    return
  }
  func.func @transform_0(%arg0: i32, %arg1: i32) -> (i32, i32, i32, i32) {
    %c0_i32 = arith.constant 0 : i32
    %c0_i32_0 = arith.constant 0 : i32
    %c0_i32_1 = arith.constant 0 : i32
    return %arg0, %arg1, %c0_i32, %c0_i32_0 : i32, i32, i32, i32
  }
  func.func @transform_1(%arg0: i32, %arg1: i32) -> (i32, i32) {
    %c0_i32 = arith.constant 0 : i32
    %c0_i32_0 = arith.constant 0 : i32
    %c0_i32_1 = arith.constant 0 : i32
    return %c0_i32, %c0_i32_0 : i32, i32
  }
  func.func @transform_2(%arg0: i32, %arg1: i32) -> (i32, i32) {
    %c0_i32 = arith.constant 0 : i32
    %c0_i32_0 = arith.constant 0 : i32
    %c0_i32_1 = arith.constant 0 : i32
    return %c0_i32, %c0_i32_0 : i32, i32
  }
  func.func @transform_3(%arg0: i32, %arg1: i32) -> (i32, i32) {
    %c0_i32 = arith.constant 0 : i32
    %c0_i32_0 = arith.constant 0 : i32
    %c0_i32_1 = arith.constant 0 : i32
    return %c0_i32, %c0_i32_0 : i32, i32
  }
  func.func @transform_4(%arg0: i32, %arg1: i32) -> (i32, i32) {
    %c0_i32 = arith.constant 0 : i32
    %c0_i32_0 = arith.constant 0 : i32
    %c0_i32_1 = arith.constant 0 : i32
    return %c0_i32, %c0_i32_0 : i32, i32
  }
  func.func @transform_5(%arg0: i32, %arg1: i32) -> (i32, i32) {
    %c0_i32 = arith.constant 0 : i32
    %c0_i32_0 = arith.constant 0 : i32
    %c0_i32_1 = arith.constant 0 : i32
    return %c0_i32, %c0_i32_0 : i32, i32
  }
  func.func @transform_6(%arg0: i32, %arg1: i32) -> (i32, i32) {
    %c0_i32 = arith.constant 0 : i32
    %c0_i32_0 = arith.constant 0 : i32
    %c0_i32_1 = arith.constant 0 : i32
    return %c0_i32, %c0_i32_0 : i32, i32
  }
  func.func @transform_7(%arg0: i32, %arg1: i32) -> (i32, i32) {
    %c0_i32 = arith.constant 0 : i32
    %c0_i32_0 = arith.constant 0 : i32
    %c0_i32_1 = arith.constant 0 : i32
    return %c0_i32, %c0_i32_0 : i32, i32
  }
  func.func @transform_8(%arg0: i32, %arg1: i32) -> (i32, i32) {
    %c0_i32 = arith.constant 0 : i32
    %c0_i32_0 = arith.constant 0 : i32
    %c0_i32_1 = arith.constant 0 : i32
    return %c0_i32, %c0_i32_0 : i32, i32
  }
  func.func @transform_9(%arg0: i32, %arg1: i32) -> (i32, i32, i32) {
    %c0_i32 = arith.constant 0 : i32
    %c0_i32_0 = arith.constant 0 : i32
    return %arg1, %arg0, %c0_i32 : i32, i32, i32
  }
}

</mosaic_0001>

<bundles_post_ra>
// kernel: tacotron2_forward.1
= control target key start
LH: loop header
LB: loop body
LE: loop exit
PB: predicated region body
PF: predicated region fallthrough
CT: control target
= control target key end

     0   :  { %s3226_s30 = smov 0   ;;  %s3228_s10 = smov 0   ;;  %s4591_s0 = inlined_call_operand.vmem [shape: s32[1,2,32,1], index: 0, kind: input, shape index: {}]   ;;  %s4592_s1 = inlined_call_operand.vmem [shape: bf16[20,512], index: 1, kind: input, shape index: {}]   ;;  %s4593_s2 = inlined_call_operand.vmem [shape: f32[1,512], index: 2, kind: input, shape index: {}]   ;;  %s4594_s3 = inlined_call_operand.vmem [shape: bf16[128,512], index: 3, kind: input, shape index: {}]   ;;  %s4595_s4 = inlined_call_operand.vmem [shape: bf16[128,512], index: 4, kind: input, shape index: {}]   ;;  %s4596_s5 = inlined_call_operand.vmem [shape: bf16[128,512], index: 5, kind: input, shape index: {}]   ;;  %s4597_s6 = inlined_call_operand.vmem [shape: f32[1,512], index: 6, kind: input, shape index: {}]   ;;  %s4598_s7 = inlined_call_operand.vmem [shape: bf16[128,128], index: 7, kind: input, shape index: {}]   ;;  %s4599_s8 = inlined_call_operand.vmem [shape: f32[1,128], index: 8, kind: input, shape index: {}]   ;;  %s4600_s9 = inlined_call_operand.vmem [shape: f32[8,8,128], index: 9, kind: output, shape index: {}]  }
   0x1   :  { %s3230_s11 = smov 0  }
   0x2 LB: > { %s28_s12 = sadd.s32 1, %s3167_s10  ;;  %p2624_p0 = scmp.ge.s32.totalorder %s3171_s11, 1  ;;  %s3171_s11 = sphi %s3230_s11, %s19_s11   ;;  %s3167_s10 = sphi %s3228_s10, %s4897_s10   ;;  %s3163_s30 = sphi %s3226_s30, %s4896_s30  }
   0x3   : > { %p29_p1 = scmp.ge.s32.totalorder %s28_s12, 2  ;;  %p307_p2 = scmp.lt.s32.totalorder %s3171_s11, 3 }
   0x5   : > { %s4899_s12 = smov (%p29_p1, %s28_s12), 0  ;;  %p308_p3 = pnand %p2624_p0, %p307_p2 }
   0x7   : > { %311 = sbr.rel (%p308_p3) target bundleno = 1780 (0x6f4), region = 56 }
   0xe   : > { %p352_p4 = scmp.lt.s32.totalorder %s3163_s30, 1  ;;  %s2627_s13 = sshll.u32 %s3163_s30, 2 }
   0xf   : > { %p360_p5 = scmp.lt.s32.totalorder %s2627_s13, 7  ;;  %p2629_p6 = scmp.ne.s32.totalorder %s3163_s30, 0 }
  0x10   : > { %s353_s14 = scalar_select %p352_p4, %s3163_s30, 1 }
  0x11   : > { %s4901_s13 = smov (!%p360_p5, %s2627_s13), 7  ;;  %372 = sbr.rel (%p2629_p6) target bundleno = 24 (0x18), region = 60 }
  0x12   : > { %s2751_s15 = sshll.u32 %s353_s14, 5  ;;  %s2628_s19 = sshll.u32 %s4901_s13, 3  ;;  %v3173_v0 = vmov (!%p2629_p6), 0.0  }
  0x13   : > { %s358_s18 = scalar_lea.vmem %s4591_s0, %s2751_s15  ;;  %s3250_s22 = scalar_lea.vmem %s4600_s9, %s2628_s19  ;;  %373 = vst [vmem:[#allocation4] sm:$0xff] (!%p2629_p6), %v3173_v0  ;;  %374 = vst [vmem:[#allocation5] sm:$0xff] (!%p2629_p6), %v3173_v0 }
  0x14   : > { %375 = vst [vmem:[#allocation6] sm:$0xff] (!%p2629_p6), %v3173_v0  ;;  %376 = vst [vmem:[#allocation7] sm:$0xff] (!%p2629_p6), %v3173_v0 }
  0x18 PF: > { %v377_v1 = vld [vmem:[%s358_s18] sm:$0xff]  ;;  %v379_v2 = vld [vmem:[%s358_s18 + $0x10] sm:$0xff]  ;;  %v4602_v3 = vmov 0   ;;  %v378_v4 = vld [vmem:[%s358_s18 + $0x8] sm:$0xff]  ;;  %vm470_vm0 = vcmask 1041408   ;;  %v4601_v31 = vlaneseq  ;;  %v3175_v37 = vmov 0.0  }
  0x19   : > { %2809 = vset.pattern.permute.xlu0 %v4602_v3  ;;  %2810 = vset.pattern.permute.xlu1 %v4602_v3  ;;  %v3257_v5 = vld [vmem:[%s4594_s3 + $0x4] ss:$16 sps:$4 sm:$0xff]   ;;  %v3262_v6 = vld [vmem:[%s4594_s3] ss:$16 sps:$4 sm:$0xff]   ;;  %v380_v7 = vld [vmem:[%s358_s18 + $0x18] sm:$0xff]  ;;  %vm463_vm3 = vcmask 162816  }
  0x1a   : > { %384 = vperm.xlu0 %2809, %v377_v1   ;;  %390 = vperm.xlu1 %2810, %v379_v2   ;;  %v3267_v8 = vld [vmem:[%s4594_s3 + $0x24] ss:$16 sps:$4 sm:$0xff]   ;;  %v3276_v9 = vld [vmem:[%s4594_s3 + $0x20] ss:$16 sps:$4 sm:$0xff]   ;;  %v2841_v21 = vld [vmem:[%s4592_s1 + $0xc] ss:$16 sps:$4 sm:$0xff]  }
  0x1b   : > { %515 = vmatprep.mubr.bf16.mxu1 %v4602_v3  ;;  %924 = vmatprep.mubr.bf16.mxu0 %v4602_v3  ;;  %v3281_v10 = vld [vmem:[%s4594_s3 + $0x44] ss:$16 sps:$4 sm:$0xff]   ;;  %v3287_v11 = vld [vmem:[%s4594_s3 + $0x40] ss:$16 sps:$4 sm:$0xff]   ;;  %v382_v32 = vand.u32 127, %v4601_v31 }
  0x1c   : > { %892 = vmatprep.subr.bf16.mxu0 %v3257_v5  ;;  %v2828_v12 = vld [vmem:[%s4592_s1 + $0x4] ss:$16 sps:$4 sm:$0xff]   ;;  %v2831_v14 = vld [vmem:[%s4592_s1] ss:$16 sps:$4 sm:$0xff]   ;;  %v410_v36 = vld [vmem:[%s4592_s1 + $0x28] sm:$0x33] }
  0x1d   : > { %893 = vmatpush1.bf16.msra.mxu0 %v3262_v6  ;;  %v3297_v13 = vld [vmem:[%s4594_s3 + $0x64] ss:$16 sps:$4 sm:$0xff]   ;;  %483 = vmatprep.subr.bf16.mxu1 %v2828_v12  ;;  %v3309_v18 = vld [vmem:[%s4594_s3 + $0x60] ss:$16 sps:$4 sm:$0xff]   ;;  %v2839_v40 = vld [vmem:[%s4592_s1 + $0x8] ss:$16 sps:$4 sm:$0xff]   ;;  %v2637_v43 = vcombine.high %v410_v36, %v410_v36  ;;  %v2636_v44 = vcombine.low %v410_v36, %v410_v36 }
  0x1e   : > { %387 = vperm.xlu0 %2809, %v378_v4   ;;  %393 = vperm.xlu1 %2810, %v380_v7   ;;  %v409_v15 = vld [vmem:[%s4592_s1 + $0x20] sm:$0x33]  ;;  %v3384_v46 = vld [vmem:[%s4594_s3 + $0xc] ss:$16 sps:$4 sm:$0xff]   ;;  %v3392_v50 = vld [vmem:[%s4594_s3 + $0x8] ss:$16 sps:$4 sm:$0xff]  }
  0x1f   : > { %894 = vmatprep.subr.bf16.mxu0 %v3267_v8  ;;  %484 = vmatpush1.bf16.msra.mxu1 %v2831_v14  ;;  %v2635_v16 = vcombine.high %v409_v15, %v409_v15  ;;  %v2634_v17 = vcombine.low %v409_v15, %v409_v15  ;;  %v3315_v19 = vld [vmem:[%s4594_s3 + $0x84] ss:$16 sps:$4 sm:$0xff]   ;;  %v3325_v22 = vld [vmem:[%s4594_s3 + $0x80] ss:$16 sps:$4 sm:$0xff]   ;;  %v478_v45 = vsel %vm470_vm0, %v2636_v44, 0  ;;  %4722 = vst [vmem:[#allocation8_spill] sm:$0xff] %v3384_v46 }
  0x20   : > { %v3330_v23 = vld [vmem:[%s4594_s3 + $0xa4] ss:$16 sps:$4 sm:$0xff]   ;;  %v3337_v24 = vld [vmem:[%s4594_s3 + $0xa0] ss:$16 sps:$4 sm:$0xff]   ;;  %v3397_v51 = vld [vmem:[%s4594_s3 + $0x2c] ss:$16 sps:$4 sm:$0xff]  }
  0x21   : > { %895 = vmatpush1.bf16.msra.mxu0 %v3276_v9  ;;  %2638 = vmatprep.subr.msk.bf16.mxu1 %vm470_vm0, %v2635_v16  ;;  %v472_v20 = vsel %vm470_vm0, %v2634_v17, 0  ;;  %v3342_v25 = vld [vmem:[%s4594_s3 + $0xc4] ss:$16 sps:$4 sm:$0xff]   ;;  %v3349_v26 = vld [vmem:[%s4594_s3 + $0xc0] ss:$16 sps:$4 sm:$0xff]  }
  0x22   : > { %896 = vmatprep.subr.bf16.mxu0 %v3281_v10  ;;  %v3354_v27 = vld [vmem:[%s4594_s3 + $0xe4] ss:$16 sps:$4 sm:$0xff]   ;;  %v3361_v29 = vld [vmem:[%s4594_s3 + $0xe0] ss:$16 sps:$4 sm:$0xff]   ;;  %v3404_v52 = vld [vmem:[%s4594_s3 + $0x28] ss:$16 sps:$4 sm:$0xff]  }
  0x23   : > { %486 = vmatpush1.bf16.msra.mxu1 %v472_v20  ;;  %v723_v28 = vld [vmem:[#allocation4] sm:$0xff]  ;;  %v3411_v53 = vld [vmem:[%s4594_s3 + $0x4c] ss:$16 sps:$4 sm:$0xff]   ;;  %v3417_v54 = vld [vmem:[%s4594_s3 + $0x48] ss:$16 sps:$4 sm:$0xff]  }
  0x24   : > { %536 = vmatprep.subr.bf16.mxu1 %v2841_v21  ;;  %v3365_v30 = vpack.c.bf16 %v723_v28, %v723_v28  ;;  %v3423_v55 = vld [vmem:[%s4594_s3 + $0x6c] ss:$16 sps:$4 sm:$0xff]   ;;  %v3430_v56 = vld [vmem:[%s4594_s3 + $0x68] ss:$16 sps:$4 sm:$0xff]   ;;  %v3488_v1 = vld [vmem:[%s4596_s5 + $0x4] ss:$16 sps:$4 sm:$0xff]  }
  0x25   : > { %897 = vmatpush1.bf16.msra.mxu0 %v3287_v11  ;;  %v3437_v57 = vld [vmem:[%s4594_s3 + $0x8c] ss:$16 sps:$4 sm:$0xff]   ;;  %v3443_v58 = vld [vmem:[%s4594_s3 + $0x88] ss:$16 sps:$4 sm:$0xff]   ;;  %v3493_v2 = vld [vmem:[%s4596_s5] ss:$16 sps:$4 sm:$0xff]  }
  0x26   : > { %898 = vmatprep.subr.bf16.mxu0 %v3297_v13  ;;  %v3449_v59 = vld [vmem:[%s4594_s3 + $0xac] ss:$16 sps:$4 sm:$0xff]   ;;  %v3455_v60 = vld [vmem:[%s4594_s3 + $0xa8] ss:$16 sps:$4 sm:$0xff]   ;;  %v3512_v12 = vld [vmem:[%s4596_s5 + $0x24] ss:$16 sps:$4 sm:$0xff]  }
  0x27   : > { %v3461_v61 = vld [vmem:[%s4594_s3 + $0xcc] ss:$16 sps:$4 sm:$0xff]   ;;  %v3467_v62 = vld [vmem:[%s4594_s3 + $0xc8] ss:$16 sps:$4 sm:$0xff]   ;;  %v3517_v14 = vld [vmem:[%s4596_s5 + $0x20] ss:$16 sps:$4 sm:$0xff]  }
  0x28   : > { %v3473_v63 = vld [vmem:[%s4594_s3 + $0xec] ss:$16 sps:$4 sm:$0xff]   ;;  %v3479_v0 = vld [vmem:[%s4594_s3 + $0xe8] ss:$16 sps:$4 sm:$0xff]   ;;  %v3536_v17 = vld [vmem:[%s4596_s5 + $0x44] ss:$16 sps:$4 sm:$0xff]  }
  0x29   : > { %899 = vmatpush1.bf16.msra.mxu0 %v3309_v18  ;;  %v3498_v4 = vld [vmem:[%s4596_s5 + $0xc] ss:$16 sps:$4 sm:$0xff]   ;;  %v3504_v7 = vld [vmem:[%s4596_s5 + $0x8] ss:$16 sps:$4 sm:$0xff]   ;;  %v3541_v20 = vld [vmem:[%s4596_s5 + $0x40] ss:$16 sps:$4 sm:$0xff]  }
  0x2a   : > { %900 = vmatprep.subr.bf16.mxu0 %v3315_v19  ;;  %v3522_v15 = vld [vmem:[%s4596_s5 + $0x2c] ss:$16 sps:$4 sm:$0xff]   ;;  %v3528_v16 = vld [vmem:[%s4596_s5 + $0x28] ss:$16 sps:$4 sm:$0xff]   ;;  %4723 = vst [vmem:[#allocation9_spill] sm:$0xff] %v3541_v20 }
  0x2b   : > { %v3546_v21 = vld [vmem:[%s4596_s5 + $0x4c] ss:$16 sps:$4 sm:$0xff]   ;;  %v3552_v28 = vld [vmem:[%s4596_s5 + $0x48] ss:$16 sps:$4 sm:$0xff]   ;;  %v3621_v44 = vld [vmem:[%s4596_s5 + $0xa0] ss:$16 sps:$4 sm:$0xff]  }
  0x2c   : > { %4724 = vst [vmem:[#allocation10_spill] sm:$0xff] %v3552_v28  ;;  %v3580_v36 = vld [vmem:[%s4596_s5 + $0x68] ss:$16 sps:$4 sm:$0xff]   ;;  %4735 = vst [vmem:[#allocation21_spill] sm:$0xff] %v3621_v44  ;;  %v3657_v31 = vld [vmem:[%s4596_s5 + $0xe4] ss:$16 sps:$4 sm:$0xff]  }
  0x2d   : > { %901 = vmatpush1.bf16.msra.mxu0 %v3325_v22  ;;  %4728 = vst [vmem:[#allocation14_spill] sm:$0xff] %v3580_v36  ;;  %4741 = vst [vmem:[#allocation27_spill] sm:$0xff] %v3657_v31 }
  0x2e   : > { %902 = vmatprep.subr.bf16.mxu0 %v3330_v23 }
  0x31   : > { %903 = vmatpush1.bf16.msra.mxu0 %v3337_v24 }
  0x32   : > { %904 = vmatprep.subr.bf16.mxu0 %v3342_v25 }
  0x35   : > { %905 = vmatpush1.bf16.msra.mxu0 %v3349_v26 }
  0x36   : > { %906 = vmatprep.subr.bf16.mxu0 %v3354_v27 }
  0x39   : > { %907 = vmatpush1.bf16.msra.mxu0 %v3361_v29 }
  0x3a   : > { %1158 = vmatprep.subr.bf16.mxu0 %v3488_v1 }
  0x3c   : > { %925 = vmatmul.mubr.bf16.vlgmr.msra.gmra.mrb[0].mxu0 %v3365_v30 }
  0x3d   : > { %1190 = vmatprep.mubr.bf16.mxu0 %v4602_v3  ;;  %1159 = vmatpush1.bf16.msra.mxu0 %v3493_v2 }
  0x3e   : > { %1160 = vmatprep.subr.bf16.mxu0 %v3512_v12 }
  0x41   : > { %1161 = vmatpush1.bf16.msra.mxu0 %v3517_v14 }
  0x42   : > { %1162 = vmatprep.subr.bf16.mxu0 %v3536_v17 }
  0x45   : > { %1163 = vmatpush1.bf16.msra.mxu0 %v3541_v20 }
  0x99   : > { %v385_v33 = vpop.permute.xlu0 %384  ;;  %v391_v34 = vpop.permute.xlu1 %390 }
  0x9a   : > { %vm395_vm1 = vcmp.eq.s32.totalorder %v385_v33, %v382_v32  ;;  %vm397_vm4 = vcmp.eq.s32.totalorder %v391_v34, %v382_v32  ;;  %v3567_v33 = vld [vmem:[%s4596_s5 + $0x60] ss:$16 sps:$4 sm:$0xff]   ;;  %v3572_v34 = vld [vmem:[%s4596_s5 + $0x6c] ss:$16 sps:$4 sm:$0xff]  }
  0x9b   : > { %v399_v38 = vsel %vm395_vm1, 1.0, %v3175_v37  ;;  %v401_v47 = vsel %vm397_vm4, 1.0, %v3175_v37  ;;  %4726 = vst [vmem:[#allocation12_spill] sm:$0xff] %v3567_v33  ;;  %4727 = vst [vmem:[#allocation13_spill] sm:$0xff] %v3572_v34 }
  0x9d   : > { %v388_v35 = vpop.permute.xlu0 %387  ;;  %v394_v41 = vpop.permute.xlu1 %393 }
  0x9e   : > { %vm396_vm2 = vcmp.eq.s32.totalorder %v388_v35, %v382_v32  ;;  %vm398_vm5 = vcmp.eq.s32.totalorder %v394_v41, %v382_v32  ;;  %v3608_v41 = vld [vmem:[%s4596_s5 + $0xa4] ss:$16 sps:$4 sm:$0xff]  }
  0x9f   : > { %v400_v39 = vsel %vm396_vm2, 1.0, %v3175_v37  ;;  %v402_v48 = vsel %vm398_vm5, 1.0, %v3175_v37  ;;  %v3587_v37 = vld [vmem:[%s4596_s5 + $0x84] ss:$16 sps:$4 sm:$0xff]   ;;  %4733 = vst [vmem:[#allocation19_spill] sm:$0xff] %v3608_v41 }
  0xa0   : > { %v403_v42 = vpack.c.bf16 %v400_v39, %v399_v38  ;;  %v404_v49 = vpack.c.bf16 %v402_v48, %v401_v47  ;;  %4729 = vst [vmem:[#allocation15_spill] sm:$0xff] %v3587_v37  ;;  %v3592_v38 = vld [vmem:[%s4596_s5 + $0x80] ss:$16 sps:$4 sm:$0xff]   ;;  %v3597_v39 = vld [vmem:[%s4596_s5 + $0x8c] ss:$16 sps:$4 sm:$0xff]  }
  0xa1   : > { %4730 = vst [vmem:[#allocation16_spill] sm:$0xff] %v3592_v38  ;;  %4731 = vst [vmem:[#allocation17_spill] sm:$0xff] %v3597_v39  ;;  %v3628_v47 = vld [vmem:[%s4596_s5 + $0xa8] ss:$16 sps:$4 sm:$0xff]   ;;  %v3633_v48 = vld [vmem:[%s4596_s5 + $0xc4] ss:$16 sps:$4 sm:$0xff]  }
  0xa2   : > { %2639 = vmatmul.mubr.msk.bf16.vlgmr.msra.gmra.mrb[0].mxu1 %vm463_vm3, %v403_v42  ;;  %4736 = vst [vmem:[#allocation22_spill] sm:$0xff] %v3628_v47  ;;  %4737 = vst [vmem:[#allocation23_spill] sm:$0xff] %v3633_v48 }
  0xa3   : > { %537 = vmatpush1.bf16.msra.mxu1 %v2839_v40  ;;  %525 = vmatprep.mubr.bf16.mxu1 %v4602_v3  ;;  %v3603_v40 = vld [vmem:[%s4596_s5 + $0x88] ss:$16 sps:$4 sm:$0xff]  }
  0xa4   : > { %2641 = vmatprep.subr.msk.bf16.mxu1 %vm470_vm0, %v2637_v43  ;;  %4732 = vst [vmem:[#allocation18_spill] sm:$0xff] %v3603_v40 }
  0xa7   : > { %539 = vmatpush1.bf16.msra.mxu1 %v478_v45 }
  0xa8   : > { %933 = vmatprep.subr.bf16.mxu1 %v3384_v46 }
  0xaa   : > { %2640 = vmatmul.mubr.msk.bf16.gmra.mrb[4].mxu1 %vm463_vm3, %v404_v49 }
  0xab   : > { %568 = vmatprep.mubr.bf16.mxu1 %v4602_v3 }
  0xb2   : > { %2642 = vmatmul.mubr.msk.bf16.vlgmr.msra.gmra.mrb[8].mxu1 %vm463_vm3, %v403_v42  ;;  %v3615_v42 = vld [vmem:[%s4596_s5 + $0xac] ss:$16 sps:$4 sm:$0xff]  }
  0xb3   : > { %934 = vmatpush1.bf16.msra.mxu1 %v3392_v50  ;;  %578 = vmatprep.mubr.bf16.mxu1 %v4602_v3  ;;  %4734 = vst [vmem:[#allocation20_spill] sm:$0xff] %v3615_v42 }
  0xb4   : > { %935 = vmatprep.subr.bf16.mxu1 %v3397_v51 }
  0xb7   : > { %936 = vmatpush1.bf16.msra.mxu1 %v3404_v52 }
  0xb8   : > { %937 = vmatprep.subr.bf16.mxu1 %v3411_v53 }
  0xba   : > { %2643 = vmatmul.mubr.msk.bf16.gmra.mrb[12].mxu1 %vm463_vm3, %v404_v49  ;;  %v3639_v49 = vld [vmem:[%s4596_s5 + $0xcc] ss:$16 sps:$4 sm:$0xff]  }
  0xbb   : > { %938 = vmatpush1.bf16.msra.mxu1 %v3417_v54  ;;  %965 = vmatprep.mubr.bf16.mxu1 %v4602_v3  ;;  %4738 = vst [vmem:[#allocation24_spill] sm:$0xff] %v3639_v49 }
  0xbc   : > { %939 = vmatprep.subr.bf16.mxu1 %v3423_v55 }
  0xbf   : > { %940 = vmatpush1.bf16.msra.mxu1 %v3430_v56 }
  0xc0   : > { %941 = vmatprep.subr.bf16.mxu1 %v3437_v57 }
  0xc3   : > { %942 = vmatpush1.bf16.msra.mxu1 %v3443_v58 }
  0xc4   : > { %943 = vmatprep.subr.bf16.mxu1 %v3449_v59 }
  0xc7   : > { %944 = vmatpush1.bf16.msra.mxu1 %v3455_v60 }
  0xc8   : > { %945 = vmatprep.subr.bf16.mxu1 %v3461_v61 }
  0xcb   : > { %946 = vmatpush1.bf16.msra.mxu1 %v3467_v62 }
  0xcc   : > { %947 = vmatprep.subr.bf16.mxu1 %v3473_v63 }
  0xcf   : > { %948 = vmatpush1.bf16.msra.mxu1 %v3479_v0 }
  0xd0   : > { %1199 = vmatprep.subr.bf16.mxu1 %v3498_v4 }
  0xd2   : > { %966 = vmatmul.mubr.bf16.vlgmr.msra.gmra.mrb[16].mxu1 %v3365_v30  ;;  %v3560_v30 = vld [vmem:[%s4596_s5 + $0x64] ss:$16 sps:$4 sm:$0xff]  }
  0xd3   : > { %1231 = vmatprep.mubr.bf16.mxu1 %v4602_v3  ;;  %1200 = vmatpush1.bf16.msra.mxu1 %v3504_v7  ;;  %4725 = vst [vmem:[#allocation11_spill] sm:$0xff] %v3560_v30  ;;  %v3663_v3 = vld [vmem:[%s4596_s5 + $0xec] ss:$16 sps:$4 sm:$0xff]  }
  0xd4   : > { %1201 = vmatprep.subr.bf16.mxu1 %v3522_v15  ;;  %1164 = vmatprep.subr.bf16.mxu0 %v3560_v30  ;;  %4742 = vst [vmem:[#allocation28_spill] sm:$0xff] %v3663_v3 }
  0xd5   : > { %1165 = vmatpush1.bf16.msra.mxu0 %v3567_v33 }
  0xd6   : > { %1166 = vmatprep.subr.bf16.mxu0 %v3587_v37 }
  0xd7   : > { %1202 = vmatpush1.bf16.msra.mxu1 %v3528_v16 }
  0xd8   : > { %1203 = vmatprep.subr.bf16.mxu1 %v3546_v21 }
  0xd9   : > { %1167 = vmatpush1.bf16.msra.mxu0 %v3592_v38 }
  0xda   : > { %1168 = vmatprep.subr.bf16.mxu0 %v3608_v41 }
  0xdb   : > { %1204 = vmatpush1.bf16.msra.mxu1 %v3552_v28 }
  0xdc   : > { %1205 = vmatprep.subr.bf16.mxu1 %v3572_v34 }
  0xdd   : > { %1169 = vmatpush1.bf16.msra.mxu0 %v3621_v44 }
  0xde   : > { %1170 = vmatprep.subr.bf16.mxu0 %v3633_v48  ;;  %v3669_v48 = vld [vmem:[%s4596_s5 + $0xe0] ss:$16 sps:$4 sm:$0xff]  }
  0xdf   : > { %1206 = vmatpush1.bf16.msra.mxu1 %v3580_v36  ;;  %4743 = vst [vmem:[#allocation29_spill] sm:$0xff] %v3669_v48 }
  0xe0   : > { %1207 = vmatprep.subr.bf16.mxu1 %v3597_v39 }
  0xe3   : > { %1208 = vmatpush1.bf16.msra.mxu1 %v3603_v40 }
  0xe4   : > { %1209 = vmatprep.subr.bf16.mxu1 %v3615_v42  ;;  %v411_v42 = vld [vmem:[%s4593_s2] sm:$0xf] }
  0xe7   : > { %1210 = vmatpush1.bf16.msra.mxu1 %v3628_v47  ;;  %v725_v47 = vld [vmem:[#allocation6] sm:$0xff] }
  0xe8   : > { %1211 = vmatprep.subr.bf16.mxu1 %v3639_v49  ;;  %v3676_v49 = vld [vmem:[%s4596_s5 + $0xe8] ss:$16 sps:$4 sm:$0xff]   ;;  %v997_v44 = vpack.c.bf16 %v725_v47, %v725_v47 }
  0xe9   : > { %4744 = vst [vmem:[#allocation30_spill] sm:$0xff] %v3676_v49  ;;  %v3699_v47 = vld [vmem:[%s4595_s4 + $0x8] ss:$16 sps:$4 sm:$0xff]  }
  0xea   : > { %4748 = vst [vmem:[#allocation34_spill] sm:$0xff] %v3699_v47 }
 0x10f   : > { %v3562_v32 = vpop.f32.mrb[0].mxu0 }
 0x110   : > { %v3574_v35 = vpop.f32.mrb[1].mxu0 }
 0x111   : > { %v930_v43 = vpop.f32.mrb[2].mxu0 }
 0x112   : > { %v931_v45 = vpop.f32.mrb[3].mxu0  ;;  %v3645_v43 = vld [vmem:[%s4596_s5 + $0xc0] ss:$16 sps:$4 sm:$0xff]  }
 0x113   : > { %4739 = vst [vmem:[#allocation25_spill] sm:$0xff] %v3645_v43  ;;  %v3652_v45 = vld [vmem:[%s4596_s5 + $0xc8] ss:$16 sps:$4 sm:$0xff]   ;;  %1171 = vmatpush1.bf16.msra.mxu0 %v3645_v43  ;;  %v3684_v43 = vld [vmem:[%s4595_s4 + $0x4] ss:$16 sps:$4 sm:$0xff]  }
 0x114   : > { %4740 = vst [vmem:[#allocation26_spill] sm:$0xff] %v3652_v45  ;;  %1212 = vmatpush1.bf16.msra.mxu1 %v3652_v45  ;;  %1172 = vmatprep.subr.bf16.mxu0 %v3657_v31  ;;  %4745 = vst [vmem:[#allocation31_spill] sm:$0xff] %v3684_v43  ;;  %v3689_v31 = vld [vmem:[%s4595_s4 + $0xc] ss:$16 sps:$4 sm:$0xff]   ;;  %v4751_v45 = vmov 0  }
 0x115   : > { %1213 = vmatprep.subr.bf16.mxu1 %v3663_v3  ;;  %4746 = vst [vmem:[#allocation32_spill] sm:$0xff] %v3689_v31  ;;  %v3694_v3 = vld [vmem:[%s4595_s4] ss:$16 sps:$4 sm:$0xff]  }
 0x116   : > { %4747 = vst [vmem:[#allocation33_spill] sm:$0xff] %v3694_v3 }
 0x117   : > { %1173 = vmatpush1.bf16.msra.mxu0 %v3669_v48  ;;  %v3713_v48 = vld [vmem:[%s4595_s4 + $0x2c] ss:$16 sps:$4 sm:$0xff]  }
 0x118   : > { %1214 = vmatpush1.bf16.msra.mxu1 %v3676_v49  ;;  %1400 = vmatprep.subr.bf16.mxu0 %v3684_v43  ;;  %v3708_v49 = vld [vmem:[%s4595_s4 + $0x24] ss:$16 sps:$4 sm:$0xff]   ;;  %4750 = vst [vmem:[#allocation36_spill] sm:$0xff] %v3713_v48 }
 0x119   : > { %1441 = vmatprep.subr.bf16.mxu1 %v3689_v31  ;;  %4749 = vst [vmem:[#allocation35_spill] sm:$0xff] %v3708_v49  ;;  %v3739_v31 = vld [vmem:[%s4595_s4 + $0x4c] ss:$16 sps:$4 sm:$0xff]  }
 0x11a   : > { %1191 = vmatmul.mubr.bf16.vlgmr.msra.gmra.mrb[4].mxu0 %v997_v44  ;;  %4755 = vst [vmem:[#allocation40_spill] sm:$0xff] %v3739_v31 }
 0x11b   : > { %1232 = vmatmul.mubr.bf16.vlgmr.msra.gmra.mrb[20].mxu1 %v997_v44  ;;  %1401 = vmatpush1.bf16.msra.mxu0 %v3694_v3  ;;  %v3719_v44 = vld [vmem:[%s4595_s4 + $0x20] ss:$16 sps:$4 sm:$0xff]   ;;  %v3734_v3 = vld [vmem:[%s4595_s4 + $0x44] ss:$16 sps:$4 sm:$0xff]  }
 0x11c   : > { %1442 = vmatpush1.bf16.msra.mxu1 %v3699_v47  ;;  %1432 = vmatprep.mubr.bf16.mxu0 %v4751_v45  ;;  %4752 = vst [vmem:[#allocation37_spill] sm:$0xff] %v3719_v44  ;;  %v3724_v47 = vld [vmem:[%s4595_s4 + $0x28] ss:$16 sps:$4 sm:$0xff]   ;;  %4754 = vst [vmem:[#allocation39_spill] sm:$0xff] %v3734_v3 }
 0x11d   : > { %4753 = vst [vmem:[#allocation38_spill] sm:$0xff] %v3724_v47  ;;  %1473 = vmatprep.mubr.bf16.mxu1 %v4751_v45  ;;  %1402 = vmatprep.subr.bf16.mxu0 %v3708_v49  ;;  %v3744_v49 = vld [vmem:[%s4595_s4 + $0x40] ss:$16 sps:$4 sm:$0xff]  }
 0x11e   : > { %1443 = vmatprep.subr.bf16.mxu1 %v3713_v48  ;;  %4756 = vst [vmem:[#allocation41_spill] sm:$0xff] %v3744_v49  ;;  %v3763_v48 = vld [vmem:[%s4595_s4 + $0x6c] ss:$16 sps:$4 sm:$0xff]  }
 0x11f   : > { %1403 = vmatpush1.bf16.msra.mxu0 %v3719_v44  ;;  %v3749_v44 = vld [vmem:[%s4595_s4 + $0x48] ss:$16 sps:$4 sm:$0xff]   ;;  %4759 = vst [vmem:[#allocation44_spill] sm:$0xff] %v3763_v48 }
 0x120   : > { %1444 = vmatpush1.bf16.msra.mxu1 %v3724_v47  ;;  %4757 = vst [vmem:[#allocation42_spill] sm:$0xff] %v3749_v44  ;;  %1404 = vmatprep.subr.bf16.mxu0 %v3734_v3  ;;  %v3758_v47 = vld [vmem:[%s4595_s4 + $0x64] ss:$16 sps:$4 sm:$0xff]   ;;  %v3768_v3 = vld [vmem:[%s4595_s4 + $0x60] ss:$16 sps:$4 sm:$0xff]  }
 0x121   : > { %1445 = vmatprep.subr.bf16.mxu1 %v3739_v31  ;;  %4758 = vst [vmem:[#allocation43_spill] sm:$0xff] %v3758_v47  ;;  %4760 = vst [vmem:[#allocation45_spill] sm:$0xff] %v3768_v3  ;;  %v3787_v31 = vld [vmem:[%s4595_s4 + $0x8c] ss:$16 sps:$4 sm:$0xff]  }
 0x122   : > { %4763 = vst [vmem:[#allocation48_spill] sm:$0xff] %v3787_v31 }
 0x123   : > { %1405 = vmatpush1.bf16.msra.mxu0 %v3744_v49  ;;  %v3773_v49 = vld [vmem:[%s4595_s4 + $0x68] ss:$16 sps:$4 sm:$0xff]  }
 0x124   : > { %1446 = vmatpush1.bf16.msra.mxu1 %v3749_v44  ;;  %4761 = vst [vmem:[#allocation46_spill] sm:$0xff] %v3773_v49  ;;  %1406 = vmatprep.subr.bf16.mxu0 %v3758_v47  ;;  %v3782_v44 = vld [vmem:[%s4595_s4 + $0x84] ss:$16 sps:$4 sm:$0xff]   ;;  %v3792_v47 = vld [vmem:[%s4595_s4 + $0x80] ss:$16 sps:$4 sm:$0xff]  }
 0x125   : > { %1447 = vmatprep.subr.bf16.mxu1 %v3763_v48  ;;  %4762 = vst [vmem:[#allocation47_spill] sm:$0xff] %v3782_v44  ;;  %4764 = vst [vmem:[#allocation49_spill] sm:$0xff] %v3792_v47  ;;  %v3811_v48 = vld [vmem:[%s4595_s4 + $0xac] ss:$16 sps:$4 sm:$0xff]  }
 0x126   : > { %4767 = vst [vmem:[#allocation52_spill] sm:$0xff] %v3811_v48 }
 0x127   : > { %1407 = vmatpush1.bf16.msra.mxu0 %v3768_v3  ;;  %v3797_v3 = vld [vmem:[%s4595_s4 + $0x88] ss:$16 sps:$4 sm:$0xff]  }
 0x128   : > { %1448 = vmatpush1.bf16.msra.mxu1 %v3773_v49  ;;  %4765 = vst [vmem:[#allocation50_spill] sm:$0xff] %v3797_v3  ;;  %1408 = vmatprep.subr.bf16.mxu0 %v3782_v44  ;;  %v3806_v49 = vld [vmem:[%s4595_s4 + $0xa4] ss:$16 sps:$4 sm:$0xff]   ;;  %v3816_v44 = vld [vmem:[%s4595_s4 + $0xa0] ss:$16 sps:$4 sm:$0xff]  }
 0x129   : > { %1449 = vmatprep.subr.bf16.mxu1 %v3787_v31  ;;  %4766 = vst [vmem:[#allocation51_spill] sm:$0xff] %v3806_v49  ;;  %4768 = vst [vmem:[#allocation53_spill] sm:$0xff] %v3816_v44  ;;  %v3835_v31 = vld [vmem:[%s4595_s4 + $0xcc] ss:$16 sps:$4 sm:$0xff]  }
 0x12a   : > { %4771 = vst [vmem:[#allocation56_spill] sm:$0xff] %v3835_v31 }
 0x12b   : > { %1409 = vmatpush1.bf16.msra.mxu0 %v3792_v47  ;;  %v3821_v47 = vld [vmem:[%s4595_s4 + $0xa8] ss:$16 sps:$4 sm:$0xff]  }
 0x12c   : > { %1450 = vmatpush1.bf16.msra.mxu1 %v3797_v3  ;;  %4769 = vst [vmem:[#allocation54_spill] sm:$0xff] %v3821_v47  ;;  %1410 = vmatprep.subr.bf16.mxu0 %v3806_v49  ;;  %v3830_v3 = vld [vmem:[%s4595_s4 + $0xc4] ss:$16 sps:$4 sm:$0xff]   ;;  %v3840_v49 = vld [vmem:[%s4595_s4 + $0xc0] ss:$16 sps:$4 sm:$0xff]  }
 0x12d   : > { %1451 = vmatprep.subr.bf16.mxu1 %v3811_v48  ;;  %4770 = vst [vmem:[#allocation55_spill] sm:$0xff] %v3830_v3  ;;  %4772 = vst [vmem:[#allocation57_spill] sm:$0xff] %v3840_v49  ;;  %v3859_v48 = vld [vmem:[%s4595_s4 + $0xec] ss:$16 sps:$4 sm:$0xff]  }
 0x12e   : > { %4775 = vst [vmem:[#allocation60_spill] sm:$0xff] %v3859_v48 }
 0x12f   : > { %1411 = vmatpush1.bf16.msra.mxu0 %v3816_v44  ;;  %v3845_v44 = vld [vmem:[%s4595_s4 + $0xc8] ss:$16 sps:$4 sm:$0xff]  }
 0x130   : > { %1452 = vmatpush1.bf16.msra.mxu1 %v3821_v47  ;;  %4773 = vst [vmem:[#allocation58_spill] sm:$0xff] %v3845_v44  ;;  %1412 = vmatprep.subr.bf16.mxu0 %v3830_v3  ;;  %v3854_v47 = vld [vmem:[%s4595_s4 + $0xe4] ss:$16 sps:$4 sm:$0xff]   ;;  %v3864_v3 = vld [vmem:[%s4595_s4 + $0xe0] ss:$16 sps:$4 sm:$0xff]  }
 0x131   : > { %1453 = vmatprep.subr.bf16.mxu1 %v3835_v31  ;;  %4774 = vst [vmem:[#allocation59_spill] sm:$0xff] %v3854_v47  ;;  %4776 = vst [vmem:[#allocation61_spill] sm:$0xff] %v3864_v3 }
 0x133   : > { %1413 = vmatpush1.bf16.msra.mxu0 %v3840_v49  ;;  %v3869_v49 = vld [vmem:[%s4595_s4 + $0xe8] ss:$16 sps:$4 sm:$0xff]  }
 0x134   : > { %1454 = vmatpush1.bf16.msra.mxu1 %v3845_v44  ;;  %4777 = vst [vmem:[#allocation62_spill] sm:$0xff] %v3869_v49  ;;  %1414 = vmatprep.subr.bf16.mxu0 %v3854_v47  ;;  %v4778_v44 = vlaneseq }
 0x135   : > { %1455 = vmatprep.subr.bf16.mxu1 %v3859_v48 }
 0x136   : > { %v3878_v31 = vshrl.u32 %v4778_v44, 7 }
 0x137   : > { %1415 = vmatpush1.bf16.msra.mxu0 %v3864_v3 }
 0x138   : > { %1456 = vmatpush1.bf16.msra.mxu1 %v3869_v49  ;;  %1510 = vmatprep.subr.bf16.mxu0 %v3257_v5  ;;  %4779 = vst [vmem:[#allocation63_spill] sm:$0xff] %v3878_v31  ;;  %v4707_v43 = vsub.s32 0, %v3878_v31  ;;  %v4710_v47 = vsub.s32 1, %v3878_v31 }
 0x139   : > { %1551 = vmatprep.subr.bf16.mxu1 %v3384_v46 }
 0x13a   : > { %v416_v3 = vrot.slane %v411_v42, %v4707_v43  ;;  %v420_v49 = vrot.slane %v411_v42, %v4710_v47 }
 0x175   : > { %v517_v5 = vpop.f32.mrb[0].mxu1 }
 0x176   : > { %v518_v48 = vadd.f32 %v517_v5, %v416_v3  ;;  %v519_v46 = vpop.f32.mrb[1].mxu1 }
 0x177   : > { %v520_v41 = vadd.f32 %v519_v46, %v420_v49  ;;  %v521_v44 = vpop.f32.mrb[2].mxu1 }
 0x178   : > { %v3889_v40 = vadd.f32 %v521_v44, %v416_v3  ;;  %v974_v38 = vadd.f32 %v3562_v32, %v518_v48  ;;  %v523_v39 = vpop.f32.mrb[3].mxu1  ;;  %v4713_v44 = vsub.s32 2, %v3878_v31  ;;  %v4714_v32 = vsub.s32 3, %v3878_v31 }
 0x179   : > { %v3892_v37 = vadd.f32 %v523_v39, %v420_v49  ;;  %v975_v36 = vadd.f32 %v3574_v35, %v520_v41 }
 0x17a   : > { %4780 = vst [vmem:[#allocation64_spill] sm:$0xff] %v3889_v40  ;;  %v424_v35 = vrot.slane %v411_v42, %v4713_v44 }
 0x17b   : > { %4781 = vst [vmem:[#allocation65_spill] sm:$0xff] %v3892_v37  ;;  %v982_v40 = vmul.f32 0.5, %v975_v36  ;;  %v724_v36 = vld [vmem:[#allocation5] sm:$0xff] }
 0x17d   : > { %v527_v33 = vpop.f32.mrb[4].mxu1  ;;  %2973 = vtanh.f32 %v982_v40 }
 0x17e   : > { %v3895_v34 = vadd.f32 %v527_v33, %v416_v3  ;;  %v529_v43 = vpop.f32.mrb[5].mxu1  ;;  %v428_v33 = vrot.slane %v411_v42, %v4714_v32  ;;  %v978_v42 = vmul.f32 0.5, %v974_v38 }
 0x17f   : > { %v3897_v30 = vadd.f32 %v529_v43, %v420_v49  ;;  %v531_v47 = vpop.f32.mrb[6].mxu1 }
 0x180   : > { %4782 = vst [vmem:[#allocation66_spill] sm:$0xff] %v3895_v34  ;;  %v3899_v5 = vadd.f32 %v531_v47, %v416_v3  ;;  %v533_v46 = vpop.f32.mrb[7].mxu1  ;;  %2975 = vtanh.f32 %v978_v42 }
 0x181   : > { %4783 = vst [vmem:[#allocation67_spill] sm:$0xff] %v3897_v30  ;;  %v3901_v28 = vadd.f32 %v533_v46, %v420_v49 }
 0x182   : > { %4784 = vst [vmem:[#allocation68_spill] sm:$0xff] %v3899_v5 }
 0x183   : > { %4785 = vst [vmem:[#allocation69_spill] sm:$0xff] %v3901_v28 }
 0x185   : > { %v570_v39 = vpop.f32.mrb[8].mxu1 }
 0x186   : > { %v572_v41 = vpop.f32.mrb[9].mxu1 }
 0x187   : > { %v574_v48 = vpop.f32.mrb[10].mxu1  ;;  %v573_v32 = vadd.f32 %v572_v41, %v428_v33  ;;  %v2974_v31 = vpop.eup %2973 }
 0x188   : > { %v3909_v43 = vadd.f32 %v574_v48, %v424_v35  ;;  %v576_v3 = vpop.f32.mrb[11].mxu1  ;;  %v571_v48 = vadd.f32 %v570_v39, %v424_v35 }
 0x189   : > { %v3911_v47 = vadd.f32 %v576_v3, %v428_v33 }
 0x18a   : > { %4786 = vst [vmem:[#allocation70_spill] sm:$0xff] %v3909_v43 }
 0x18b   : > { %4787 = vst [vmem:[#allocation71_spill] sm:$0xff] %v3911_v47 }
 0x18d   : > { %v580_v49 = vpop.f32.mrb[12].mxu1 }
 0x18e   : > { %v3913_v46 = vadd.f32 %v580_v49, %v424_v35  ;;  %v582_v28 = vpop.f32.mrb[13].mxu1 }
 0x18f   : > { %v3915_v5 = vadd.f32 %v582_v28, %v428_v33  ;;  %v584_v30 = vpop.f32.mrb[14].mxu1 }
 0x190   : > { %4788 = vst [vmem:[#allocation72_spill] sm:$0xff] %v3913_v46  ;;  %v3917_v34 = vadd.f32 %v584_v30, %v424_v35  ;;  %v586_v44 = vpop.f32.mrb[15].mxu1  ;;  %v984_v30 = vmul.f32 0.5, %v2974_v31 }
 0x191   : > { %4789 = vst [vmem:[#allocation73_spill] sm:$0xff] %v3915_v5  ;;  %v3919_v37 = vadd.f32 %v586_v44, %v428_v33  ;;  %v2976_v5 = vpop.eup %2975 }
 0x192   : > { %4790 = vst [vmem:[#allocation74_spill] sm:$0xff] %v3917_v34  ;;  %v980_v20 = vmul.f32 0.5, %v2976_v5  ;;  %v985_v44 = vadd.f32 0.5, %v984_v30  ;;  %v4807_v30 = vld [vmem:[#allocation24_spill] sm:$0xff] }
 0x193   : > { %4791 = vst [vmem:[#allocation75_spill] sm:$0xff] %v3919_v37 }
 0x194   : > { %v981_v38 = vadd.f32 0.5, %v980_v20  ;;  %v991_v42 = vmul.f32 %v985_v44, %v724_v36  ;;  %v4808_v44 = vld [vmem:[#allocation25_spill] sm:$0xff]  ;;  %v4809_v36 = vld [vmem:[#allocation26_spill] sm:$0xff] }
 0x1a5   : > { %v967_v3 = vpop.f32.mrb[16].mxu1 }
 0x1a6   : > { %v976_v47 = vadd.f32 %v967_v3, %v571_v48  ;;  %v969_v43 = vpop.f32.mrb[17].mxu1  ;;  %v4804_v48 = vld [vmem:[#allocation21_spill] sm:$0xff]  ;;  %v4805_v3 = vld [vmem:[#allocation22_spill] sm:$0xff] }
 0x1a7   : > { %v977_v49 = vadd.f32 %v969_v43, %v573_v32  ;;  %v971_v46 = vpop.f32.mrb[18].mxu1 }
 0x1a8   : > { %2977 = vtanh.f32 %v976_v47  ;;  %v972_v28 = vpop.f32.mrb[19].mxu1 }
 0x1a9   : > { %v987_v34 = vmul.f32 0.5, %v977_v49  ;;  %v4806_v28 = vld [vmem:[#allocation23_spill] sm:$0xff] }
 0x1ab   : > { %2979 = vtanh.f32 %v987_v34 }
 0x1b2   : > { %v2978_v40 = vpop.eup %2977 }
 0x1b3   : > { %v992_v39 = vmul.f32 %v2978_v40, %v981_v38  ;;  %v4810_v38 = vld [vmem:[#allocation27_spill] sm:$0xff]  ;;  %v4811_v40 = vld [vmem:[#allocation28_spill] sm:$0xff] }
 0x1b5   : > { %v3921_v35 = vadd.f32 %v992_v39, %v991_v42  ;;  %v2980_v32 = vpop.eup %2979  ;;  %v4812_v42 = vld [vmem:[#allocation29_spill] sm:$0xff]  ;;  %v4813_v39 = vld [vmem:[#allocation30_spill] sm:$0xff] }
 0x1b6   : > { %v989_v41 = vmul.f32 0.5, %v2980_v32  ;;  %v4814_v32 = vld [vmem:[#allocation31_spill] sm:$0xff] }
 0x1b7   : > { %2981 = vtanh.f32 %v3921_v35 }
 0x1b8   : > { %v990_v33 = vadd.f32 0.5, %v989_v41  ;;  %v4815_v41 = vld [vmem:[#allocation32_spill] sm:$0xff] }
 0x1c1   : > { %v2982_v43 = vpop.eup %2981 }
 0x1c2   : > { %v995_v47 = vmul.f32 %v2982_v43, %v990_v33  ;;  %v701_v33 = vld [vmem:[%s4597_s6] sm:$0xf]  ;;  %v4816_v43 = vld [vmem:[#allocation63_spill] sm:$0xff] }
 0x1c4   : > { %v996_v46 = vpack.c.bf16 %v995_v47, %v995_v47  ;;  %v4817_v47 = vsub.s32 0, %v4816_v43 }
 0x1c6   : > { %1433 = vmatmul.mubr.bf16.vlgmr.msra.gmra.mrb[8].mxu0 %v996_v46  ;;  %1474 = vmatmul.mubr.bf16.vlgmr.msra.gmra.mrb[24].mxu1 %v996_v46 }
 0x1c7   : > { %1511 = vmatpush1.bf16.msra.mxu0 %v3262_v6  ;;  %1552 = vmatpush1.bf16.msra.mxu1 %v3392_v50  ;;  %v4792_v6 = vld [vmem:[#allocation9_spill] sm:$0xff] }
 0x1c8   : > { %1512 = vmatprep.subr.bf16.mxu0 %v3267_v8  ;;  %1553 = vmatprep.subr.bf16.mxu1 %v3397_v51  ;;  %v4793_v8 = vld [vmem:[#allocation10_spill] sm:$0xff] }
 0x1c9   : > { %1542 = vmatprep.mubr.bf16.mxu0 %v4751_v45  ;;  %1583 = vmatprep.mubr.bf16.mxu1 %v4751_v45 }
 0x1cb   : > { %1513 = vmatpush1.bf16.msra.mxu0 %v3276_v9  ;;  %1554 = vmatpush1.bf16.msra.mxu1 %v3404_v52  ;;  %v4794_v9 = vld [vmem:[#allocation11_spill] sm:$0xff] }
 0x1cc   : > { %1514 = vmatprep.subr.bf16.mxu0 %v3281_v10  ;;  %1555 = vmatprep.subr.bf16.mxu1 %v3411_v53  ;;  %v4795_v10 = vld [vmem:[#allocation13_spill] sm:$0xff] }
 0x1cf   : > { %1515 = vmatpush1.bf16.msra.mxu0 %v3287_v11  ;;  %1556 = vmatpush1.bf16.msra.mxu1 %v3417_v54  ;;  %v4796_v11 = vld [vmem:[#allocation12_spill] sm:$0xff] }
 0x1d0   : > { %1516 = vmatprep.subr.bf16.mxu0 %v3297_v13  ;;  %1557 = vmatprep.subr.bf16.mxu1 %v3423_v55  ;;  %v4797_v13 = vld [vmem:[#allocation14_spill] sm:$0xff] }
 0x1d3   : > { %1517 = vmatpush1.bf16.msra.mxu0 %v3309_v18  ;;  %1558 = vmatpush1.bf16.msra.mxu1 %v3430_v56  ;;  %v4798_v18 = vld [vmem:[#allocation15_spill] sm:$0xff] }
 0x1d4   : > { %1518 = vmatprep.subr.bf16.mxu0 %v3315_v19  ;;  %1559 = vmatprep.subr.bf16.mxu1 %v3437_v57  ;;  %v4799_v19 = vld [vmem:[#allocation17_spill] sm:$0xff] }
 0x1d7   : > { %1519 = vmatpush1.bf16.msra.mxu0 %v3325_v22  ;;  %1560 = vmatpush1.bf16.msra.mxu1 %v3443_v58 }
 0x1d8   : > { %1520 = vmatprep.subr.bf16.mxu0 %v3330_v23  ;;  %1561 = vmatprep.subr.bf16.mxu1 %v3449_v59  ;;  %v4800_v23 = vld [vmem:[#allocation16_spill] sm:$0xff] }
 0x1db   : > { %1521 = vmatpush1.bf16.msra.mxu0 %v3337_v24  ;;  %1562 = vmatpush1.bf16.msra.mxu1 %v3455_v60  ;;  %v4801_v24 = vld [vmem:[#allocation18_spill] sm:$0xff] }
 0x1dc   : > { %1522 = vmatprep.subr.bf16.mxu0 %v3342_v25  ;;  %1563 = vmatprep.subr.bf16.mxu1 %v3461_v61 }
 0x1df   : > { %1523 = vmatpush1.bf16.msra.mxu0 %v3349_v26  ;;  %1564 = vmatpush1.bf16.msra.mxu1 %v3467_v62  ;;  %v4802_v26 = vld [vmem:[#allocation19_spill] sm:$0xff] }
 0x1e0   : > { %1524 = vmatprep.subr.bf16.mxu0 %v3354_v27  ;;  %1565 = vmatprep.subr.bf16.mxu1 %v3473_v63  ;;  %v4803_v27 = vld [vmem:[#allocation20_spill] sm:$0xff] }
 0x1e3   : > { %1525 = vmatpush1.bf16.msra.mxu0 %v3361_v29  ;;  %1566 = vmatpush1.bf16.msra.mxu1 %v3479_v0 }
 0x1e4   : > { %1616 = vmatprep.subr.bf16.mxu0 %v3488_v1  ;;  %1657 = vmatprep.subr.bf16.mxu1 %v3498_v4 }
 0x1e6   : > { %1543 = vmatmul.mubr.bf16.vlgmr.msra.gmra.mrb[12].mxu0 %v996_v46  ;;  %1584 = vmatmul.mubr.bf16.vlgmr.msra.gmra.mrb[28].mxu1 %v996_v46  ;;  %v3997_v46 = vrot.slane %v701_v33, %v4817_v47 }
 0x1e7   : > { %1617 = vmatpush1.bf16.msra.mxu0 %v3493_v2  ;;  %1658 = vmatpush1.bf16.msra.mxu1 %v3504_v7 }
 0x1e8   : > { %1618 = vmatprep.subr.bf16.mxu0 %v3512_v12  ;;  %1659 = vmatprep.subr.bf16.mxu1 %v3522_v15 }
 0x1e9   : > { %1648 = vmatprep.mubr.bf16.mxu0 %v4751_v45  ;;  %1689 = vmatprep.mubr.bf16.mxu1 %v4751_v45 }
 0x1eb   : > { %1619 = vmatpush1.bf16.msra.mxu0 %v3517_v14  ;;  %1660 = vmatpush1.bf16.msra.mxu1 %v3528_v16 }
 0x1ec   : > { %1620 = vmatprep.subr.bf16.mxu0 %v3536_v17  ;;  %1661 = vmatprep.subr.bf16.mxu1 %v3546_v21 }
 0x1ed   : > { %v1192_v22 = vpop.f32.mrb[4].mxu0 }
 0x1ee   : > { %v1194_v25 = vpop.f32.mrb[5].mxu0  ;;  %v1233_v31 = vpop.f32.mrb[20].mxu1 }
 0x1ef   : > { %1621 = vmatpush1.bf16.msra.mxu0 %v4792_v6  ;;  %1662 = vmatpush1.bf16.msra.mxu1 %v4793_v8  ;;  %v1196_v29 = vpop.f32.mrb[6].mxu0  ;;  %v1235_v34 = vpop.f32.mrb[21].mxu1 }
 0x1f0   : > { %1622 = vmatprep.subr.bf16.mxu0 %v4794_v9  ;;  %1663 = vmatprep.subr.bf16.mxu1 %v4795_v10  ;;  %v1197_v20 = vpop.f32.mrb[7].mxu0  ;;  %v1237_v5 = vpop.f32.mrb[22].mxu1 }
 0x1f1   : > { %v1238_v49 = vpop.f32.mrb[23].mxu1  ;;  %v4818_v5 = vsub.s32 1, %v4816_v43 }
 0x1f3   : > { %1623 = vmatpush1.bf16.msra.mxu0 %v4796_v11  ;;  %1664 = vmatpush1.bf16.msra.mxu1 %v4797_v13  ;;  %v4001_v49 = vrot.slane %v701_v33, %v4818_v5 }
 0x1f4   : > { %1624 = vmatprep.subr.bf16.mxu0 %v4798_v18  ;;  %1665 = vmatprep.subr.bf16.mxu1 %v4799_v19 }
 0x1f7   : > { %1625 = vmatpush1.bf16.msra.mxu0 %v4800_v23  ;;  %1666 = vmatpush1.bf16.msra.mxu1 %v4801_v24 }
 0x1f8   : > { %1626 = vmatprep.subr.bf16.mxu0 %v4802_v26  ;;  %1667 = vmatprep.subr.bf16.mxu1 %v4803_v27 }
 0x1fb   : > { %1627 = vmatpush1.bf16.msra.mxu0 %v4804_v48  ;;  %1668 = vmatpush1.bf16.msra.mxu1 %v4805_v3 }
 0x1fc   : > { %1628 = vmatprep.subr.bf16.mxu0 %v4806_v28  ;;  %1669 = vmatprep.subr.bf16.mxu1 %v4807_v30  ;;  %v4819_v30 = vsub.s32 2, %v4816_v43 }
 0x1fe   : > { %v4006_v47 = vrot.slane %v701_v33, %v4819_v30 }
 0x1ff   : > { %1629 = vmatpush1.bf16.msra.mxu0 %v4808_v44  ;;  %1670 = vmatpush1.bf16.msra.mxu1 %v4809_v36 }
 0x200   : > { %1630 = vmatprep.subr.bf16.mxu0 %v4810_v38  ;;  %1671 = vmatprep.subr.bf16.mxu1 %v4811_v40 }
 0x203   : > { %1631 = vmatpush1.bf16.msra.mxu0 %v4812_v42  ;;  %1672 = vmatpush1.bf16.msra.mxu1 %v4813_v39 }
 0x204   : > { %1698 = vmatprep.subr.bf16.mxu0 %v4814_v32  ;;  %1739 = vmatprep.subr.bf16.mxu1 %v4815_v41 }
 0x299   : > { %v1434_v29 = vpop.f32.mrb[8].mxu0  ;;  %v1475_v20 = vpop.f32.mrb[24].mxu1 }
 0x29a   : > { %v1435_v37 = vadd.f32 %v1434_v29, %v1192_v22  ;;  %v1476_v39 = vadd.f32 %v1475_v20, %v1233_v31  ;;  %v1436_v42 = vpop.f32.mrb[9].mxu0  ;;  %v1477_v32 = vpop.f32.mrb[25].mxu1  ;;  %v4822_v29 = vld [vmem:[#allocation64_spill] sm:$0xff] }
 0x29b   : > { %v1437_v40 = vadd.f32 %v1436_v42, %v1194_v25  ;;  %v1478_v41 = vadd.f32 %v1477_v32, %v1235_v34  ;;  %v1438_v38 = vpop.f32.mrb[10].mxu0  ;;  %v1479_v36 = vpop.f32.mrb[26].mxu1  ;;  %v4820_v25 = vsub.s32 3, %v4816_v43 }
 0x29c   : > { %v1482_v44 = vadd.f32 %v1435_v37, %v3997_v46  ;;  %v1439_v28 = vpop.f32.mrb[11].mxu0  ;;  %v1480_v3 = vpop.f32.mrb[27].mxu1  ;;  %v1484_v22 = vadd.f32 %v1476_v39, %v4006_v47 }
 0x29d   : > { %v1483_v48 = vadd.f32 %v1437_v40, %v4001_v49  ;;  %v4012_v31 = vrot.slane %v701_v33, %v4820_v25 }
 0x29e   : > { %v1486_v5 = vmul.f32 0.5, %v1482_v44  ;;  %v726_v44 = vld [vmem:[#allocation7] sm:$0xff] }
 0x29f   : > { %v1490_v27 = vmul.f32 0.5, %v1483_v48  ;;  %v1485_v37 = vadd.f32 %v1478_v41, %v4012_v31 }
 0x2a0   : > { %2983 = vtanh.f32 %v1486_v5  ;;  %v4823_v5 = vld [vmem:[#allocation70_spill] sm:$0xff] }
 0x2a1   : > { %2985 = vtanh.f32 %v1490_v27  ;;  %v1495_v34 = vmul.f32 0.5, %v1485_v37 }
 0x2a2   : > { %2987 = vtanh.f32 %v1484_v22 }
 0x2a3   : > { %2989 = vtanh.f32 %v1495_v34  ;;  %v4824_v34 = vld [vmem:[#allocation65_spill] sm:$0xff] }
 0x2aa   : > { %v2984_v30 = vpop.eup %2983 }
 0x2ab   : > { %v2986_v36 = vpop.eup %2985  ;;  %v1488_v28 = vmul.f32 0.5, %v2984_v30 }
 0x2ac   : > { %v1492_v3 = vmul.f32 0.5, %v2986_v36  ;;  %v2988_v48 = vpop.eup %2987  ;;  %v4825_v36 = vld [vmem:[#allocation71_spill] sm:$0xff] }
 0x2ad   : > { %v1489_v38 = vadd.f32 0.5, %v1488_v28  ;;  %v2990_v27 = vpop.eup %2989 }
 0x2ae   : > { %v1493_v40 = vadd.f32 0.5, %v1492_v3  ;;  %v1497_v33 = vmul.f32 0.5, %v2990_v27 }
 0x2af   : > { %v1500_v42 = vmul.f32 %v2988_v48, %v1489_v38 }
 0x2b0   : > { %v1499_v39 = vmul.f32 %v1493_v40, %v726_v44 }
 0x2b2   : > { %v4015_v32 = vadd.f32 %v1500_v42, %v1499_v39  ;;  %v1498_v42 = vadd.f32 0.5, %v1497_v33 }
 0x2b4   : > { %4821 = vst [vmem:[#allocation9_spill] sm:$0xff] %v4015_v32  ;;  %2991 = vtanh.f32 %v4015_v32 }
 0x2b9   : > { %v1544_v43 = vpop.f32.mrb[12].mxu0  ;;  %v1585_v41 = vpop.f32.mrb[28].mxu1 }
 0x2ba   : > { %v1592_v20 = vadd.f32 %v1544_v43, %v4822_v29  ;;  %v1594_v22 = vadd.f32 %v1585_v41, %v4823_v5  ;;  %v1546_v25 = vpop.f32.mrb[13].mxu0  ;;  %v1587_v37 = vpop.f32.mrb[29].mxu1  ;;  %v4827_v41 = vld [vmem:[#allocation33_spill] sm:$0xff]  ;;  %v4828_v29 = vld [vmem:[#allocation34_spill] sm:$0xff]  ;;  %v4830_v5 = vld [vmem:[#allocation36_spill] sm:$0xff] }
 0x2bb   : > { %v1593_v30 = vadd.f32 %v1546_v25, %v4824_v34  ;;  %v1595_v28 = vadd.f32 %v1587_v37, %v4825_v36  ;;  %v1548_v3 = vpop.f32.mrb[14].mxu0  ;;  %v1589_v38 = vpop.f32.mrb[30].mxu1  ;;  %v4831_v37 = vld [vmem:[#allocation37_spill] sm:$0xff]  ;;  %v4832_v34 = vld [vmem:[#allocation38_spill] sm:$0xff]  ;;  %v4833_v36 = vld [vmem:[#allocation39_spill] sm:$0xff] }
 0x2bc   : > { %v1596_v44 = vmul.f32 0.5, %v1592_v20  ;;  %v1549_v48 = vpop.f32.mrb[15].mxu0  ;;  %v1590_v40 = vpop.f32.mrb[31].mxu1  ;;  %v4829_v20 = vld [vmem:[#allocation35_spill] sm:$0xff]  ;;  %v4834_v3 = vld [vmem:[#allocation40_spill] sm:$0xff] }
 0x2bd   : > { %v1600_v39 = vmul.f32 0.5, %v1593_v30  ;;  %v1605_v33 = vmul.f32 0.5, %v1595_v28  ;;  %v4835_v40 = vld [vmem:[#allocation41_spill] sm:$0xff] }
 0x2be   : > { %v2992_v27 = vpop.eup %2991  ;;  %2993 = vtanh.f32 %v1596_v44 }
 0x2bf   : > { %v4022_v32 = vmul.f32 %v2992_v27, %v1498_v42  ;;  %2995 = vtanh.f32 %v1600_v39  ;;  %v4836_v42 = vld [vmem:[#allocation42_spill] sm:$0xff]  ;;  %v4837_v27 = vld [vmem:[#allocation43_spill] sm:$0xff] }
 0x2c0   : > { %2997 = vtanh.f32 %v1594_v22 }
 0x2c1   : > { %4826 = vst [vmem:[#allocation10_spill] sm:$0xff] %v4022_v32  ;;  %v1615_v43 = vpack.c.bf16 %v4022_v32, %v4022_v32  ;;  %2999 = vtanh.f32 %v1605_v33  ;;  %v4842_v33 = vld [vmem:[#allocation47_spill] sm:$0xff] }
 0x2c3   : > { %1649 = vmatmul.mubr.bf16.vlgmr.msra.gmra.mrb[16].mxu0 %v1615_v43  ;;  %1690 = vmatmul.mubr.bf16.vlgmr.msra.gmra.mrb[32].mxu1 %v1615_v43  ;;  %v4838_v43 = vld [vmem:[#allocation44_spill] sm:$0xff] }
 0x2c4   : > { %1699 = vmatpush1.bf16.msra.mxu0 %v4827_v41  ;;  %1740 = vmatpush1.bf16.msra.mxu1 %v4828_v29 }
 0x2c5   : > { %1700 = vmatprep.subr.bf16.mxu0 %v4829_v20  ;;  %1741 = vmatprep.subr.bf16.mxu1 %v4830_v5 }
 0x2c6   : > { %1730 = vmatprep.mubr.bf16.mxu0 %v4751_v45  ;;  %1771 = vmatprep.mubr.bf16.mxu1 %v4751_v45 }
 0x2c8   : > { %v2994_v25 = vpop.eup %2993  ;;  %1701 = vmatpush1.bf16.msra.mxu0 %v4831_v37  ;;  %1742 = vmatpush1.bf16.msra.mxu1 %v4832_v34 }
 0x2c9   : > { %v2996_v22 = vpop.eup %2995  ;;  %v1598_v30 = vmul.f32 0.5, %v2994_v25  ;;  %1702 = vmatprep.subr.bf16.mxu0 %v4833_v36  ;;  %1743 = vmatprep.subr.bf16.mxu1 %v4834_v3  ;;  %v4840_v36 = vld [vmem:[#allocation45_spill] sm:$0xff] }
 0x2ca   : > { %v1602_v38 = vmul.f32 0.5, %v2996_v22  ;;  %v2998_v48 = vpop.eup %2997  ;;  %v4841_v22 = vld [vmem:[#allocation46_spill] sm:$0xff] }
 0x2cb   : > { %v1599_v44 = vadd.f32 0.5, %v1598_v30  ;;  %v4843_v30 = vld [vmem:[#allocation48_spill] sm:$0xff] }
 0x2cc   : > { %v1603_v28 = vadd.f32 0.5, %v1602_v38  ;;  %1703 = vmatpush1.bf16.msra.mxu0 %v4835_v40  ;;  %1744 = vmatpush1.bf16.msra.mxu1 %v4836_v42  ;;  %v3000_v38 = vpop.eup %2999 }
 0x2cd   : > { %v1610_v39 = vmul.f32 %v2998_v48, %v1599_v44  ;;  %1704 = vmatprep.subr.bf16.mxu0 %v4837_v27  ;;  %1745 = vmatprep.subr.bf16.mxu1 %v4838_v43  ;;  %v4844_v44 = vld [vmem:[#allocation49_spill] sm:$0xff]  ;;  %v4845_v48 = vld [vmem:[#allocation50_spill] sm:$0xff]  ;;  %v4846_v43 = vld [vmem:[#allocation51_spill] sm:$0xff] }
 0x2ce   : > { %v1609_v25 = vmul.f32 %v1603_v28, %v3921_v35  ;;  %v4847_v35 = vld [vmem:[#allocation52_spill] sm:$0xff]  ;;  %v1607_v28 = vmul.f32 0.5, %v3000_v38  ;;  %v4854_v27 = vld [vmem:[#allocation59_spill] sm:$0xff]  ;;  %v4856_v38 = vld [vmem:[#allocation61_spill] sm:$0xff] }
 0x2d0   : > { %v4041_v32 = vadd.f32 %v1610_v39, %v1609_v25  ;;  %1705 = vmatpush1.bf16.msra.mxu0 %v4840_v36  ;;  %1746 = vmatpush1.bf16.msra.mxu1 %v4841_v22  ;;  %v4848_v39 = vld [vmem:[#allocation53_spill] sm:$0xff]  ;;  %v4849_v25 = vld [vmem:[#allocation54_spill] sm:$0xff]  ;;  %v4850_v22 = vld [vmem:[#allocation55_spill] sm:$0xff] }
 0x2d1   : > { %1706 = vmatprep.subr.bf16.mxu0 %v4842_v33  ;;  %1747 = vmatprep.subr.bf16.mxu1 %v4843_v30  ;;  %v4851_v33 = vld [vmem:[#allocation56_spill] sm:$0xff]  ;;  %v1608_v30 = vadd.f32 0.5, %v1607_v28 }
 0x2d2   : > { %4839 = vst [vmem:[#allocation11_spill] sm:$0xff] %v4041_v32  ;;  %3001 = vtanh.f32 %v4041_v32  ;;  %v4852_v32 = vld [vmem:[#allocation57_spill] sm:$0xff]  ;;  %v4858_v28 = vld [vmem:[#allocation8_spill] sm:$0xff] }
 0x2d4   : > { %1707 = vmatpush1.bf16.msra.mxu0 %v4844_v44  ;;  %1748 = vmatpush1.bf16.msra.mxu1 %v4845_v48  ;;  %v4853_v44 = vld [vmem:[#allocation58_spill] sm:$0xff] }
 0x2d5   : > { %1708 = vmatprep.subr.bf16.mxu0 %v4846_v43  ;;  %1749 = vmatprep.subr.bf16.mxu1 %v4847_v35  ;;  %v4855_v43 = vld [vmem:[#allocation60_spill] sm:$0xff] }
 0x2d8   : > { %1709 = vmatpush1.bf16.msra.mxu0 %v4848_v39  ;;  %1750 = vmatpush1.bf16.msra.mxu1 %v4849_v25  ;;  %v4857_v39 = vld [vmem:[#allocation62_spill] sm:$0xff] }
 0x2d9   : > { %1710 = vmatprep.subr.bf16.mxu0 %v4850_v22  ;;  %1751 = vmatprep.subr.bf16.mxu1 %v4851_v33  ;;  %v4065_v33 = vld [vmem:[%s4594_s3 + $0x4] ss:$16 sps:$4 sm:$0xff]  }
 0x2dc   : > { %v3002_v36 = vpop.eup %3001  ;;  %1711 = vmatpush1.bf16.msra.mxu0 %v4852_v32  ;;  %1752 = vmatpush1.bf16.msra.mxu1 %v4853_v44 }
 0x2dd   : > { %v1613_v48 = vmul.f32 %v3002_v36, %v1608_v30  ;;  %1712 = vmatprep.subr.bf16.mxu0 %v4854_v27  ;;  %1753 = vmatprep.subr.bf16.mxu1 %v4855_v43  ;;  %v4072_v36 = vld [vmem:[%s4594_s3] ss:$16 sps:$4 sm:$0xff]   ;;  %v4079_v30 = vld [vmem:[%s4594_s3 + $0x24] ss:$16 sps:$4 sm:$0xff]  }
 0x2df   : > { %v1614_v25 = vpack.c.bf16 %v1613_v48, %v1613_v48  ;;  %v4088_v48 = vld [vmem:[%s4594_s3 + $0x20] ss:$16 sps:$4 sm:$0xff]  }
 0x2e0   : > { %1713 = vmatpush1.bf16.msra.mxu0 %v4856_v38  ;;  %1754 = vmatpush1.bf16.msra.mxu1 %v4857_v39 }
 0x2e1   : > { %1809 = vmatprep.subr.bf16.mxu0 %v4065_v33  ;;  %1850 = vmatprep.subr.bf16.mxu1 %v4858_v28 }
 0x2e3   : > { %1731 = vmatmul.mubr.bf16.vlgmr.msra.gmra.mrb[20].mxu0 %v1614_v25  ;;  %1772 = vmatmul.mubr.bf16.vlgmr.msra.gmra.mrb[36].mxu1 %v1614_v25 }
 0x2e4   : > { %1810 = vmatpush1.bf16.msra.mxu0 %v4072_v36  ;;  %1851 = vmatpush1.bf16.msra.mxu1 %v3392_v50  ;;  %v4095_v50 = vld [vmem:[%s4594_s3 + $0x44] ss:$16 sps:$4 sm:$0xff]  }
 0x2e5   : > { %1811 = vmatprep.subr.bf16.mxu0 %v4079_v30  ;;  %1852 = vmatprep.subr.bf16.mxu1 %v3397_v51  ;;  %v4102_v51 = vld [vmem:[%s4594_s3 + $0x40] ss:$16 sps:$4 sm:$0xff]  }
 0x2e6   : > { %1841 = vmatprep.mubr.bf16.mxu0 %v4751_v45  ;;  %1882 = vmatprep.mubr.bf16.mxu1 %v4751_v45 }
 0x2e8   : > { %1812 = vmatpush1.bf16.msra.mxu0 %v4088_v48  ;;  %1853 = vmatpush1.bf16.msra.mxu1 %v3404_v52  ;;  %v4109_v52 = vld [vmem:[%s4594_s3 + $0x64] ss:$16 sps:$4 sm:$0xff]  }
 0x2e9   : > { %1813 = vmatprep.subr.bf16.mxu0 %v4095_v50  ;;  %1854 = vmatprep.subr.bf16.mxu1 %v3411_v53  ;;  %v4116_v53 = vld [vmem:[%s4594_s3 + $0x60] ss:$16 sps:$4 sm:$0xff]  }
 0x2ec   : > { %1814 = vmatpush1.bf16.msra.mxu0 %v4102_v51  ;;  %1855 = vmatpush1.bf16.msra.mxu1 %v3417_v54  ;;  %v4123_v54 = vld [vmem:[%s4594_s3 + $0x84] ss:$16 sps:$4 sm:$0xff]  }
 0x2ed   : > { %1815 = vmatprep.subr.bf16.mxu0 %v4109_v52  ;;  %1856 = vmatprep.subr.bf16.mxu1 %v3423_v55  ;;  %v4130_v55 = vld [vmem:[%s4594_s3 + $0x80] ss:$16 sps:$4 sm:$0xff]  }
 0x2f0   : > { %1816 = vmatpush1.bf16.msra.mxu0 %v4116_v53  ;;  %1857 = vmatpush1.bf16.msra.mxu1 %v3430_v56  ;;  %v4137_v56 = vld [vmem:[%s4594_s3 + $0xa4] ss:$16 sps:$4 sm:$0xff]  }
 0x2f1   : > { %1817 = vmatprep.subr.bf16.mxu0 %v4123_v54  ;;  %1858 = vmatprep.subr.bf16.mxu1 %v3437_v57  ;;  %v4144_v57 = vld [vmem:[%s4594_s3 + $0xa0] ss:$16 sps:$4 sm:$0xff]  }
 0x2f4   : > { %1818 = vmatpush1.bf16.msra.mxu0 %v4130_v55  ;;  %1859 = vmatpush1.bf16.msra.mxu1 %v3443_v58  ;;  %v4151_v58 = vld [vmem:[%s4594_s3 + $0xc4] ss:$16 sps:$4 sm:$0xff]  }
 0x2f5   : > { %1819 = vmatprep.subr.bf16.mxu0 %v4137_v56  ;;  %1860 = vmatprep.subr.bf16.mxu1 %v3449_v59  ;;  %v4158_v59 = vld [vmem:[%s4594_s3 + $0xc0] ss:$16 sps:$4 sm:$0xff]  }
 0x2f8   : > { %1820 = vmatpush1.bf16.msra.mxu0 %v4144_v57  ;;  %1861 = vmatpush1.bf16.msra.mxu1 %v3455_v60  ;;  %v4165_v60 = vld [vmem:[%s4594_s3 + $0xe4] ss:$16 sps:$4 sm:$0xff]  }
 0x2f9   : > { %1821 = vmatprep.subr.bf16.mxu0 %v4151_v58  ;;  %1862 = vmatprep.subr.bf16.mxu1 %v3461_v61  ;;  %v4172_v61 = vld [vmem:[%s4594_s3 + $0xe0] ss:$16 sps:$4 sm:$0xff]  }
 0x2fc   : > { %1822 = vmatpush1.bf16.msra.mxu0 %v4158_v59  ;;  %1863 = vmatpush1.bf16.msra.mxu1 %v3467_v62  ;;  %v4859_v62 = vld [vmem:[#allocation20_spill] sm:$0xff] }
 0x2fd   : > { %1823 = vmatprep.subr.bf16.mxu0 %v4165_v60  ;;  %1864 = vmatprep.subr.bf16.mxu1 %v3473_v63  ;;  %v4860_v63 = vld [vmem:[#allocation21_spill] sm:$0xff] }
 0x300   : > { %1824 = vmatpush1.bf16.msra.mxu0 %v4172_v61  ;;  %1865 = vmatpush1.bf16.msra.mxu1 %v3479_v0  ;;  %v4861_v0 = vld [vmem:[#allocation22_spill] sm:$0xff] }
 0x301   : > { %1915 = vmatprep.subr.bf16.mxu0 %v3488_v1  ;;  %1956 = vmatprep.subr.bf16.mxu1 %v3498_v4  ;;  %v4862_v1 = vld [vmem:[#allocation23_spill] sm:$0xff]  ;;  %v4864_v4 = vld [vmem:[#allocation25_spill] sm:$0xff] }
 0x303   : > { %1842 = vmatmul.mubr.bf16.vlgmr.msra.gmra.mrb[24].mxu0 %v1614_v25  ;;  %1883 = vmatmul.mubr.bf16.vlgmr.msra.gmra.mrb[40].mxu1 %v1614_v25 }
 0x304   : > { %1916 = vmatpush1.bf16.msra.mxu0 %v3493_v2  ;;  %1957 = vmatpush1.bf16.msra.mxu1 %v3504_v7  ;;  %v4863_v2 = vld [vmem:[#allocation24_spill] sm:$0xff]  ;;  %v4865_v7 = vld [vmem:[#allocation26_spill] sm:$0xff] }
 0x305   : > { %1917 = vmatprep.subr.bf16.mxu0 %v3512_v12  ;;  %1958 = vmatprep.subr.bf16.mxu1 %v3522_v15  ;;  %v4866_v12 = vld [vmem:[#allocation27_spill] sm:$0xff]  ;;  %v4868_v15 = vld [vmem:[#allocation29_spill] sm:$0xff] }
 0x306   : > { %1947 = vmatprep.mubr.bf16.mxu0 %v4751_v45  ;;  %1988 = vmatprep.mubr.bf16.mxu1 %v4751_v45 }
 0x308   : > { %1918 = vmatpush1.bf16.msra.mxu0 %v3517_v14  ;;  %1959 = vmatpush1.bf16.msra.mxu1 %v3528_v16  ;;  %v4867_v14 = vld [vmem:[#allocation28_spill] sm:$0xff]  ;;  %v4869_v16 = vld [vmem:[#allocation30_spill] sm:$0xff] }
 0x309   : > { %1919 = vmatprep.subr.bf16.mxu0 %v3536_v17  ;;  %1960 = vmatprep.subr.bf16.mxu1 %v3546_v21  ;;  %v4870_v17 = vld [vmem:[#allocation31_spill] sm:$0xff]  ;;  %v4871_v21 = vld [vmem:[#allocation32_spill] sm:$0xff] }
 0x30c   : > { %1920 = vmatpush1.bf16.msra.mxu0 %v4792_v6  ;;  %1961 = vmatpush1.bf16.msra.mxu1 %v4793_v8 }
 0x30d   : > { %1921 = vmatprep.subr.bf16.mxu0 %v4794_v9  ;;  %1962 = vmatprep.subr.bf16.mxu1 %v4795_v10 }
 0x310   : > { %1922 = vmatpush1.bf16.msra.mxu0 %v4796_v11  ;;  %1963 = vmatpush1.bf16.msra.mxu1 %v4797_v13 }
 0x311   : > { %1923 = vmatprep.subr.bf16.mxu0 %v4798_v18  ;;  %1964 = vmatprep.subr.bf16.mxu1 %v4799_v19 }
 0x314   : > { %1924 = vmatpush1.bf16.msra.mxu0 %v4800_v23  ;;  %1965 = vmatpush1.bf16.msra.mxu1 %v4801_v24 }
 0x315   : > { %1925 = vmatprep.subr.bf16.mxu0 %v4802_v26  ;;  %1966 = vmatprep.subr.bf16.mxu1 %v4859_v62 }
 0x318   : > { %1926 = vmatpush1.bf16.msra.mxu0 %v4860_v63  ;;  %1967 = vmatpush1.bf16.msra.mxu1 %v4861_v0 }
 0x319   : > { %1927 = vmatprep.subr.bf16.mxu0 %v4862_v1  ;;  %1968 = vmatprep.subr.bf16.mxu1 %v4863_v2 }
 0x31c   : > { %1928 = vmatpush1.bf16.msra.mxu0 %v4864_v4  ;;  %1969 = vmatpush1.bf16.msra.mxu1 %v4865_v7 }
 0x31d   : > { %1929 = vmatprep.subr.bf16.mxu0 %v4866_v12  ;;  %1970 = vmatprep.subr.bf16.mxu1 %v4867_v14 }
 0x320   : > { %1930 = vmatpush1.bf16.msra.mxu0 %v4868_v15  ;;  %1971 = vmatpush1.bf16.msra.mxu1 %v4869_v16 }
 0x321   : > { %1997 = vmatprep.subr.bf16.mxu0 %v4870_v17  ;;  %2038 = vmatprep.subr.bf16.mxu1 %v4871_v21 }
 0x396   : > { %v1650_v6 = vpop.f32.mrb[16].mxu0  ;;  %v1691_v8 = vpop.f32.mrb[32].mxu1 }
 0x397   : > { %v1652_v9 = vpop.f32.mrb[17].mxu0  ;;  %v1693_v10 = vpop.f32.mrb[33].mxu1 }
 0x398   : > { %v1654_v11 = vpop.f32.mrb[18].mxu0  ;;  %v1695_v13 = vpop.f32.mrb[34].mxu1 }
 0x399   : > { %v1655_v18 = vpop.f32.mrb[19].mxu0  ;;  %v1696_v19 = vpop.f32.mrb[35].mxu1 }
 0x3b6   : > { %v1732_v23 = vpop.f32.mrb[20].mxu0  ;;  %v1773_v24 = vpop.f32.mrb[36].mxu1 }
 0x3b7   : > { %v1733_v26 = vadd.f32 %v1732_v23, %v1650_v6  ;;  %v1774_v25 = vadd.f32 %v1773_v24, %v1691_v8  ;;  %v1734_v28 = vpop.f32.mrb[21].mxu0  ;;  %v1775_v62 = vpop.f32.mrb[37].mxu1  ;;  %v4872_v24 = vld [vmem:[#allocation9_spill] sm:$0xff] }
 0x3b8   : > { %v1735_v63 = vadd.f32 %v1734_v28, %v1652_v9  ;;  %v1776_v0 = vadd.f32 %v1775_v62, %v1693_v10  ;;  %v1736_v1 = vpop.f32.mrb[22].mxu0  ;;  %v1777_v2 = vpop.f32.mrb[38].mxu1 }
 0x3b9   : > { %v1780_v4 = vadd.f32 %v1733_v26, %v3997_v46  ;;  %v1737_v7 = vpop.f32.mrb[23].mxu0  ;;  %v1778_v12 = vpop.f32.mrb[39].mxu1  ;;  %v1782_v17 = vadd.f32 %v1774_v25, %v4006_v47  ;;  %v4873_v1 = vld [vmem:[#allocation66_spill] sm:$0xff] }
 0x3ba   : > { %v1781_v14 = vadd.f32 %v1735_v63, %v4001_v49  ;;  %v1783_v21 = vadd.f32 %v1776_v0, %v4012_v31 }
 0x3bb   : > { %v1784_v15 = vmul.f32 0.5, %v1780_v4  ;;  %v4874_v4 = vld [vmem:[#allocation72_spill] sm:$0xff] }
 0x3bc   : > { %v1788_v16 = vmul.f32 0.5, %v1781_v14  ;;  %v1793_v6 = vmul.f32 0.5, %v1783_v21 }
 0x3bd   : > { %3003 = vtanh.f32 %v1784_v15  ;;  %v4875_v15 = vld [vmem:[#allocation67_spill] sm:$0xff] }
 0x3be   : > { %3005 = vtanh.f32 %v1788_v16 }
 0x3bf   : > { %3007 = vtanh.f32 %v1782_v17  ;;  %v4876_v17 = vld [vmem:[#allocation73_spill] sm:$0xff] }
 0x3c0   : > { %3009 = vtanh.f32 %v1793_v6 }
 0x3c7   : > { %v3004_v8 = vpop.eup %3003 }
 0x3c8   : > { %v3006_v9 = vpop.eup %3005  ;;  %v1786_v10 = vmul.f32 0.5, %v3004_v8 }
 0x3c9   : > { %v1790_v11 = vmul.f32 0.5, %v3006_v9  ;;  %v3008_v18 = vpop.eup %3007 }
 0x3ca   : > { %v1787_v13 = vadd.f32 0.5, %v1786_v10  ;;  %v3010_v25 = vpop.eup %3009 }
 0x3cb   : > { %v1791_v19 = vadd.f32 0.5, %v1790_v11  ;;  %v1795_v62 = vmul.f32 0.5, %v3010_v25 }
 0x3cc   : > { %v1798_v23 = vmul.f32 %v3008_v18, %v1787_v13 }
 0x3cd   : > { %v1797_v26 = vmul.f32 %v1791_v19, %v4872_v24  ;;  %v1796_v13 = vadd.f32 0.5, %v1795_v62 }
 0x3cf   : > { %v4217_v28 = vadd.f32 %v1798_v23, %v1797_v26 }
 0x3d1   : > { %3011 = vtanh.f32 %v4217_v28 }
 0x3d6   : > { %v1843_v63 = vpop.f32.mrb[24].mxu0  ;;  %v1884_v0 = vpop.f32.mrb[40].mxu1 }
 0x3d7   : > { %v1891_v2 = vadd.f32 %v1843_v63, %v4873_v1  ;;  %v1893_v7 = vadd.f32 %v1884_v0, %v4874_v4  ;;  %v1845_v12 = vpop.f32.mrb[25].mxu0  ;;  %v1886_v14 = vpop.f32.mrb[41].mxu1  ;;  %v4877_v0 = vld [vmem:[#allocation39_spill] sm:$0xff] }
 0x3d8   : > { %v1892_v16 = vadd.f32 %v1845_v12, %v4875_v15  ;;  %v1894_v21 = vadd.f32 %v1886_v14, %v4876_v17  ;;  %v1847_v6 = vpop.f32.mrb[26].mxu0  ;;  %v1888_v8 = vpop.f32.mrb[42].mxu1  ;;  %v4881_v12 = vld [vmem:[#allocation45_spill] sm:$0xff]  ;;  %v4883_v14 = vld [vmem:[#allocation47_spill] sm:$0xff]  ;;  %v4884_v15 = vld [vmem:[#allocation48_spill] sm:$0xff] }
 0x3d9   : > { %v1895_v9 = vmul.f32 0.5, %v1891_v2  ;;  %v1848_v10 = vpop.f32.mrb[27].mxu0  ;;  %v1889_v11 = vpop.f32.mrb[43].mxu1  ;;  %v4878_v2 = vld [vmem:[#allocation43_spill] sm:$0xff]  ;;  %v4888_v6 = vld [vmem:[#allocation53_spill] sm:$0xff]  ;;  %v4889_v8 = vld [vmem:[#allocation54_spill] sm:$0xff] }
 0x3da   : > { %v1899_v18 = vmul.f32 0.5, %v1892_v16  ;;  %v1904_v26 = vmul.f32 0.5, %v1894_v21  ;;  %v4886_v16 = vld [vmem:[#allocation50_spill] sm:$0xff]  ;;  %v4887_v17 = vld [vmem:[#allocation51_spill] sm:$0xff] }
 0x3db   : > { %v3012_v19 = vpop.eup %3011  ;;  %3013 = vtanh.f32 %v1895_v9  ;;  %v4890_v9 = vld [vmem:[#allocation56_spill] sm:$0xff] }
 0x3dc   : > { %v4224_v23 = vmul.f32 %v3012_v19, %v1796_v13  ;;  %3015 = vtanh.f32 %v1899_v18  ;;  %v3092_v18 = vld [vmem:[%s4596_s5 + $0x28] ss:$16 sps:$4 sm:$0xff]   ;;  %v3093_v19 = vld [vmem:[%s4596_s5 + $0x44] ss:$16 sps:$4 sm:$0xff]  }
 0x3dd   : > { %3017 = vtanh.f32 %v1893_v7 }
 0x3de   : > { %v1914_v24 = vpack.c.bf16 %v4224_v23, %v4224_v23  ;;  %3019 = vtanh.f32 %v1904_v26  ;;  %v3095_v26 = vld [vmem:[%s4596_s5 + $0x40] ss:$16 sps:$4 sm:$0xff]  }
 0x3e0   : > { %1948 = vmatmul.mubr.bf16.vlgmr.msra.gmra.mrb[28].mxu0 %v1914_v24  ;;  %1989 = vmatmul.mubr.bf16.vlgmr.msra.gmra.mrb[44].mxu1 %v1914_v24  ;;  %v3094_v24 = vld [vmem:[%s4596_s5 + $0x4c] ss:$16 sps:$4 sm:$0xff]  }
 0x3e1   : > { %1998 = vmatpush1.bf16.msra.mxu0 %v4827_v41  ;;  %2039 = vmatpush1.bf16.msra.mxu1 %v4828_v29 }
 0x3e2   : > { %1999 = vmatprep.subr.bf16.mxu0 %v4829_v20  ;;  %2040 = vmatprep.subr.bf16.mxu1 %v4830_v5 }
 0x3e3   : > { %2029 = vmatprep.mubr.bf16.mxu0 %v4751_v45  ;;  %2070 = vmatprep.mubr.bf16.mxu1 %v4751_v45 }
 0x3e5   : > { %v3014_v25 = vpop.eup %3013  ;;  %2000 = vmatpush1.bf16.msra.mxu0 %v4831_v37  ;;  %2041 = vmatpush1.bf16.msra.mxu1 %v4832_v34  ;;  %v4879_v37 = vld [vmem:[#allocation44_spill] sm:$0xff]  ;;  %v4880_v34 = vld [vmem:[#allocation11_spill] sm:$0xff] }
 0x3e6   : > { %v3016_v62 = vpop.eup %3015  ;;  %v1897_v63 = vmul.f32 0.5, %v3014_v25  ;;  %2001 = vmatprep.subr.bf16.mxu0 %v4877_v0  ;;  %2042 = vmatprep.subr.bf16.mxu1 %v4834_v3  ;;  %v4882_v3 = vld [vmem:[#allocation46_spill] sm:$0xff]  ;;  %v3096_v25 = vld [vmem:[%s4596_s5 + $0x48] ss:$16 sps:$4 sm:$0xff]  }
 0x3e7   : > { %v1901_v41 = vmul.f32 0.5, %v3016_v62  ;;  %v3018_v20 = vpop.eup %3017  ;;  %v3097_v62 = vld [vmem:[%s4596_s5 + $0x64] ss:$16 sps:$4 sm:$0xff]   ;;  %v3099_v0 = vld [vmem:[%s4596_s5 + $0x60] ss:$16 sps:$4 sm:$0xff]  }
 0x3e8   : > { %v1898_v29 = vadd.f32 0.5, %v1897_v63  ;;  %v3098_v63 = vld [vmem:[%s4596_s5 + $0x6c] ss:$16 sps:$4 sm:$0xff]  }
 0x3e9   : > { %v1902_v5 = vadd.f32 0.5, %v1901_v41  ;;  %2002 = vmatpush1.bf16.msra.mxu0 %v4835_v40  ;;  %2043 = vmatpush1.bf16.msra.mxu1 %v4836_v42  ;;  %v3020_v40 = vpop.eup %3019  ;;  %v4885_v42 = vld [vmem:[#allocation49_spill] sm:$0xff] }
 0x3ea   : > { %v1909_v1 = vmul.f32 %v3018_v20, %v1898_v29  ;;  %2003 = vmatprep.subr.bf16.mxu0 %v4878_v2  ;;  %2044 = vmatprep.subr.bf16.mxu1 %v4879_v37  ;;  %v1906_v21 = vmul.f32 0.5, %v3020_v40  ;;  %v3100_v41 = vld [vmem:[%s4596_s5 + $0x68] ss:$16 sps:$4 sm:$0xff]   ;;  %v3101_v29 = vld [vmem:[%s4596_s5 + $0x84] ss:$16 sps:$4 sm:$0xff]  }
 0x3eb   : > { %v1908_v4 = vmul.f32 %v1902_v5, %v4880_v34  ;;  %v3102_v20 = vld [vmem:[%s4596_s5 + $0x8c] ss:$16 sps:$4 sm:$0xff]   ;;  %v3103_v5 = vld [vmem:[%s4596_s5 + $0x80] ss:$16 sps:$4 sm:$0xff]   ;;  %v3105_v2 = vld [vmem:[%s4596_s5 + $0xa4] ss:$16 sps:$4 sm:$0xff]  }
 0x3ec   : > { %v1907_v10 = vadd.f32 0.5, %v1906_v21  ;;  %v3106_v37 = vld [vmem:[%s4596_s5 + $0xac] ss:$16 sps:$4 sm:$0xff]   ;;  %v3107_v34 = vld [vmem:[%s4596_s5 + $0xa0] ss:$16 sps:$4 sm:$0xff]  }
 0x3ed   : > { %v4243_v7 = vadd.f32 %v1909_v1, %v1908_v4  ;;  %2004 = vmatpush1.bf16.msra.mxu0 %v4881_v12  ;;  %2045 = vmatpush1.bf16.msra.mxu1 %v4882_v3  ;;  %v3104_v1 = vld [vmem:[%s4596_s5 + $0x88] ss:$16 sps:$4 sm:$0xff]   ;;  %v3109_v12 = vld [vmem:[%s4596_s5 + $0xc4] ss:$16 sps:$4 sm:$0xff]   ;;  %v3110_v3 = vld [vmem:[%s4596_s5 + $0xcc] ss:$16 sps:$4 sm:$0xff]  }
 0x3ee   : > { %2005 = vmatprep.subr.bf16.mxu0 %v4883_v14  ;;  %2046 = vmatprep.subr.bf16.mxu1 %v4884_v15  ;;  %v3108_v4 = vld [vmem:[%s4596_s5 + $0xa8] ss:$16 sps:$4 sm:$0xff]   ;;  %v3111_v14 = vld [vmem:[%s4596_s5 + $0xc0] ss:$16 sps:$4 sm:$0xff]   ;;  %v3113_v40 = vld [vmem:[%s4596_s5 + $0xe4] ss:$16 sps:$4 sm:$0xff]  }
 0x3ef   : > { %3021 = vtanh.f32 %v4243_v7  ;;  %v3112_v15 = vld [vmem:[%s4596_s5 + $0xc8] ss:$16 sps:$4 sm:$0xff]   ;;  %v3117_v21 = vld [vmem:[%s4595_s4 + $0x4] ss:$16 sps:$4 sm:$0xff]  }
 0x3f1   : > { %2006 = vmatpush1.bf16.msra.mxu0 %v4885_v42  ;;  %2047 = vmatpush1.bf16.msra.mxu1 %v4886_v16  ;;  %v3114_v42 = vld [vmem:[%s4596_s5 + $0xec] ss:$16 sps:$4 sm:$0xff]   ;;  %v3115_v16 = vld [vmem:[%s4596_s5 + $0xe0] ss:$16 sps:$4 sm:$0xff]  }
 0x3f2   : > { %2007 = vmatprep.subr.bf16.mxu0 %v4887_v17  ;;  %2048 = vmatprep.subr.bf16.mxu1 %v4847_v35  ;;  %v3116_v17 = vld [vmem:[%s4596_s5 + $0xe8] ss:$16 sps:$4 sm:$0xff]  }
 0x3f5   : > { %2008 = vmatpush1.bf16.msra.mxu0 %v4888_v6  ;;  %2049 = vmatpush1.bf16.msra.mxu1 %v4889_v8  ;;  %v3118_v6 = vld [vmem:[%s4595_s4 + $0xc] ss:$16 sps:$4 sm:$0xff]  }
 0x3f6   : > { %2009 = vmatprep.subr.bf16.mxu0 %v4850_v22  ;;  %2050 = vmatprep.subr.bf16.mxu1 %v4890_v9  ;;  %v3069_v22 = vld [vmem:[%s4594_s3 + $0xc] ss:$16 sps:$4 sm:$0xff]  }
 0x3f9   : > { %v3022_v11 = vpop.eup %3021  ;;  %2010 = vmatpush1.bf16.msra.mxu0 %v4852_v32  ;;  %2051 = vmatpush1.bf16.msra.mxu1 %v4853_v44  ;;  %v3070_v32 = vld [vmem:[%s4594_s3 + $0x8] ss:$16 sps:$4 sm:$0xff]  }
 0x3fa   : > { %v1912_v13 = vmul.f32 %v3022_v11, %v1907_v10  ;;  %2011 = vmatprep.subr.bf16.mxu0 %v4854_v27  ;;  %2052 = vmatprep.subr.bf16.mxu1 %v4855_v43  ;;  %v3071_v27 = vld [vmem:[%s4594_s3 + $0x2c] ss:$16 sps:$4 sm:$0xff]   ;;  %v3072_v43 = vld [vmem:[%s4594_s3 + $0x28] ss:$16 sps:$4 sm:$0xff]  }
 0x3fb   : > { %v3074_v44 = vld [vmem:[%s4594_s3 + $0x48] ss:$16 sps:$4 sm:$0xff]  }
 0x3fc   : > { %v1913_v35 = vpack.c.bf16 %v1912_v13, %v1912_v13 }
 0x3fd   : > { %2012 = vmatpush1.bf16.msra.mxu0 %v4856_v38  ;;  %2053 = vmatpush1.bf16.msra.mxu1 %v4857_v39  ;;  %v3075_v39 = vld [vmem:[%s4594_s3 + $0x6c] ss:$16 sps:$4 sm:$0xff]   ;;  %v3076_v38 = vld [vmem:[%s4594_s3 + $0x68] ss:$16 sps:$4 sm:$0xff]  }
 0x3fe   : > { %2108 = vmatprep.subr.bf16.mxu0 %v4065_v33  ;;  %2149 = vmatprep.subr.bf16.mxu1 %v3069_v22  ;;  %v3073_v33 = vld [vmem:[%s4594_s3 + $0x4c] ss:$16 sps:$4 sm:$0xff]  }
 0x400   : > { %2030 = vmatmul.mubr.bf16.vlgmr.msra.gmra.mrb[32].mxu0 %v1913_v35  ;;  %2071 = vmatmul.mubr.bf16.vlgmr.msra.gmra.mrb[48].mxu1 %v1913_v35 }
 0x401   : > { %2109 = vmatpush1.bf16.msra.mxu0 %v4072_v36  ;;  %2150 = vmatpush1.bf16.msra.mxu1 %v3070_v32  ;;  %v3077_v36 = vld [vmem:[%s4594_s3 + $0x8c] ss:$16 sps:$4 sm:$0xff]  }
 0x402   : > { %2110 = vmatprep.subr.bf16.mxu0 %v4079_v30  ;;  %2151 = vmatprep.subr.bf16.mxu1 %v3071_v27  ;;  %v3078_v30 = vld [vmem:[%s4594_s3 + $0x88] ss:$16 sps:$4 sm:$0xff]  }
 0x403   : > { %2140 = vmatprep.mubr.bf16.mxu0 %v4751_v45  ;;  %2181 = vmatprep.mubr.bf16.mxu1 %v4751_v45 }
 0x405   : > { %2111 = vmatpush1.bf16.msra.mxu0 %v4088_v48  ;;  %2152 = vmatpush1.bf16.msra.mxu1 %v3072_v43  ;;  %v3079_v48 = vld [vmem:[%s4594_s3 + $0xac] ss:$16 sps:$4 sm:$0xff]  }
 0x406   : > { %2112 = vmatprep.subr.bf16.mxu0 %v4095_v50  ;;  %2153 = vmatprep.subr.bf16.mxu1 %v3073_v33  ;;  %v3080_v50 = vld [vmem:[%s4594_s3 + $0xa8] ss:$16 sps:$4 sm:$0xff]  }
 0x409   : > { %2113 = vmatpush1.bf16.msra.mxu0 %v4102_v51  ;;  %2154 = vmatpush1.bf16.msra.mxu1 %v3074_v44  ;;  %v3081_v51 = vld [vmem:[%s4594_s3 + $0xcc] ss:$16 sps:$4 sm:$0xff]  }
 0x40a   : > { %2114 = vmatprep.subr.bf16.mxu0 %v4109_v52  ;;  %2155 = vmatprep.subr.bf16.mxu1 %v3075_v39  ;;  %v3082_v52 = vld [vmem:[%s4594_s3 + $0xc8] ss:$16 sps:$4 sm:$0xff]  }
 0x40d   : > { %2115 = vmatpush1.bf16.msra.mxu0 %v4116_v53  ;;  %2156 = vmatpush1.bf16.msra.mxu1 %v3076_v38  ;;  %v3083_v53 = vld [vmem:[%s4594_s3 + $0xec] ss:$16 sps:$4 sm:$0xff]  }
 0x40e   : > { %2116 = vmatprep.subr.bf16.mxu0 %v4123_v54  ;;  %2157 = vmatprep.subr.bf16.mxu1 %v3077_v36  ;;  %v3084_v54 = vld [vmem:[%s4594_s3 + $0xe8] ss:$16 sps:$4 sm:$0xff]  }
 0x411   : > { %2117 = vmatpush1.bf16.msra.mxu0 %v4130_v55  ;;  %2158 = vmatpush1.bf16.msra.mxu1 %v3078_v30  ;;  %v3085_v55 = vld [vmem:[%s4596_s5 + $0x4] ss:$16 sps:$4 sm:$0xff]  }
 0x412   : > { %2118 = vmatprep.subr.bf16.mxu0 %v4137_v56  ;;  %2159 = vmatprep.subr.bf16.mxu1 %v3079_v48  ;;  %v3086_v56 = vld [vmem:[%s4596_s5 + $0xc] ss:$16 sps:$4 sm:$0xff]  }
 0x415   : > { %2119 = vmatpush1.bf16.msra.mxu0 %v4144_v57  ;;  %2160 = vmatpush1.bf16.msra.mxu1 %v3080_v50  ;;  %v3087_v57 = vld [vmem:[%s4596_s5] ss:$16 sps:$4 sm:$0xff]  }
 0x416   : > { %2120 = vmatprep.subr.bf16.mxu0 %v4151_v58  ;;  %2161 = vmatprep.subr.bf16.mxu1 %v3081_v51  ;;  %v3088_v58 = vld [vmem:[%s4596_s5 + $0x8] ss:$16 sps:$4 sm:$0xff]  }
 0x419   : > { %2121 = vmatpush1.bf16.msra.mxu0 %v4158_v59  ;;  %2162 = vmatpush1.bf16.msra.mxu1 %v3082_v52  ;;  %v3089_v59 = vld [vmem:[%s4596_s5 + $0x24] ss:$16 sps:$4 sm:$0xff]  }
 0x41a   : > { %2122 = vmatprep.subr.bf16.mxu0 %v4165_v60  ;;  %2163 = vmatprep.subr.bf16.mxu1 %v3083_v53  ;;  %v3090_v60 = vld [vmem:[%s4596_s5 + $0x2c] ss:$16 sps:$4 sm:$0xff]  }
 0x41d   : > { %2123 = vmatpush1.bf16.msra.mxu0 %v4172_v61  ;;  %2164 = vmatpush1.bf16.msra.mxu1 %v3084_v54  ;;  %v3091_v61 = vld [vmem:[%s4596_s5 + $0x20] ss:$16 sps:$4 sm:$0xff]  }
 0x41e   : > { %2214 = vmatprep.subr.bf16.mxu0 %v3085_v55  ;;  %2255 = vmatprep.subr.bf16.mxu1 %v3086_v56 }
 0x420   : > { %2141 = vmatmul.mubr.bf16.vlgmr.msra.gmra.mrb[36].mxu0 %v1913_v35  ;;  %2182 = vmatmul.mubr.bf16.vlgmr.msra.gmra.mrb[52].mxu1 %v1913_v35 }
 0x421   : > { %2215 = vmatpush1.bf16.msra.mxu0 %v3087_v57  ;;  %2256 = vmatpush1.bf16.msra.mxu1 %v3088_v58 }
 0x422   : > { %2216 = vmatprep.subr.bf16.mxu0 %v3089_v59  ;;  %2257 = vmatprep.subr.bf16.mxu1 %v3090_v60 }
 0x423   : > { %2246 = vmatprep.mubr.bf16.mxu0 %v4751_v45  ;;  %2287 = vmatprep.mubr.bf16.mxu1 %v4751_v45 }
 0x425   : > { %2217 = vmatpush1.bf16.msra.mxu0 %v3091_v61  ;;  %2258 = vmatpush1.bf16.msra.mxu1 %v3092_v18 }
 0x426   : > { %2218 = vmatprep.subr.bf16.mxu0 %v3093_v19  ;;  %2259 = vmatprep.subr.bf16.mxu1 %v3094_v24 }
 0x429   : > { %2219 = vmatpush1.bf16.msra.mxu0 %v3095_v26  ;;  %2260 = vmatpush1.bf16.msra.mxu1 %v3096_v25 }
 0x42a   : > { %2220 = vmatprep.subr.bf16.mxu0 %v3097_v62  ;;  %2261 = vmatprep.subr.bf16.mxu1 %v3098_v63 }
 0x42d   : > { %2221 = vmatpush1.bf16.msra.mxu0 %v3099_v0  ;;  %2262 = vmatpush1.bf16.msra.mxu1 %v3100_v41 }
 0x42e   : > { %2222 = vmatprep.subr.bf16.mxu0 %v3101_v29  ;;  %2263 = vmatprep.subr.bf16.mxu1 %v3102_v20 }
 0x431   : > { %2223 = vmatpush1.bf16.msra.mxu0 %v3103_v5  ;;  %2264 = vmatpush1.bf16.msra.mxu1 %v3104_v1  ;;  %v4891_v1 = vld [vmem:[#allocation68_spill] sm:$0xff] }
 0x432   : > { %2224 = vmatprep.subr.bf16.mxu0 %v3105_v2  ;;  %2265 = vmatprep.subr.bf16.mxu1 %v3106_v37  ;;  %v4892_v37 = vld [vmem:[#allocation74_spill] sm:$0xff] }
 0x435   : > { %2225 = vmatpush1.bf16.msra.mxu0 %v3107_v34  ;;  %2266 = vmatpush1.bf16.msra.mxu1 %v3108_v4 }
 0x436   : > { %2226 = vmatprep.subr.bf16.mxu0 %v3109_v12  ;;  %2267 = vmatprep.subr.bf16.mxu1 %v3110_v3  ;;  %v4893_v3 = vld [vmem:[#allocation69_spill] sm:$0xff] }
 0x439   : > { %2227 = vmatpush1.bf16.msra.mxu0 %v3111_v14  ;;  %2268 = vmatpush1.bf16.msra.mxu1 %v3112_v15  ;;  %v4894_v15 = vld [vmem:[#allocation75_spill] sm:$0xff] }
 0x43a   : > { %2228 = vmatprep.subr.bf16.mxu0 %v3113_v40  ;;  %2269 = vmatprep.subr.bf16.mxu1 %v3114_v42 }
 0x43d   : > { %2229 = vmatpush1.bf16.msra.mxu0 %v3115_v16  ;;  %2270 = vmatpush1.bf16.msra.mxu1 %v3116_v17 }
 0x43e   : > { %2296 = vmatprep.subr.bf16.mxu0 %v3117_v21  ;;  %2337 = vmatprep.subr.bf16.mxu1 %v3118_v6 }
 0x4b3   : > { %v1949_v8 = vpop.f32.mrb[28].mxu0  ;;  %v1990_v9 = vpop.f32.mrb[44].mxu1 }
 0x4b4   : > { %v1951_v10 = vpop.f32.mrb[29].mxu0  ;;  %v1992_v11 = vpop.f32.mrb[45].mxu1 }
 0x4b5   : > { %v1953_v13 = vpop.f32.mrb[30].mxu0  ;;  %v1994_v35 = vpop.f32.mrb[46].mxu1 }
 0x4b6   : > { %v1954_v22 = vpop.f32.mrb[31].mxu0  ;;  %v1995_v32 = vpop.f32.mrb[47].mxu1  ;;  %v3119_v13 = vld [vmem:[%s4595_s4] ss:$16 sps:$4 sm:$0xff]   ;;  %v3120_v35 = vld [vmem:[%s4595_s4 + $0x8] ss:$16 sps:$4 sm:$0xff]  }
 0x4b7   : > { %v3121_v22 = vld [vmem:[%s4595_s4 + $0x24] ss:$16 sps:$4 sm:$0xff]   ;;  %v3122_v32 = vld [vmem:[%s4595_s4 + $0x2c] ss:$16 sps:$4 sm:$0xff]  }
 0x4d3   : > { %v2031_v27 = vpop.f32.mrb[32].mxu0  ;;  %v2072_v43 = vpop.f32.mrb[48].mxu1 }
 0x4d4   : > { %v2032_v33 = vadd.f32 %v2031_v27, %v1949_v8  ;;  %v2073_v44 = vadd.f32 %v2072_v43, %v1990_v9  ;;  %v2033_v39 = vpop.f32.mrb[33].mxu0  ;;  %v2074_v38 = vpop.f32.mrb[49].mxu1 }
 0x4d5   : > { %v2034_v36 = vadd.f32 %v2033_v39, %v1951_v10  ;;  %v2075_v30 = vadd.f32 %v2074_v38, %v1992_v11  ;;  %v2035_v48 = vpop.f32.mrb[34].mxu0  ;;  %v2076_v50 = vpop.f32.mrb[50].mxu1 }
 0x4d6   : > { %v2079_v51 = vadd.f32 %v2032_v33, %v3997_v46  ;;  %v2036_v52 = vpop.f32.mrb[35].mxu0  ;;  %v2077_v53 = vpop.f32.mrb[51].mxu1  ;;  %v2081_v57 = vadd.f32 %v2073_v44, %v4006_v47  ;;  %v3123_v33 = vld [vmem:[%s4595_s4 + $0x20] ss:$16 sps:$4 sm:$0xff]   ;;  %v3124_v44 = vld [vmem:[%s4595_s4 + $0x28] ss:$16 sps:$4 sm:$0xff]  }
 0x4d7   : > { %v2080_v54 = vadd.f32 %v2034_v36, %v4001_v49  ;;  %v2082_v58 = vadd.f32 %v2075_v30, %v4012_v31  ;;  %v3125_v36 = vld [vmem:[%s4595_s4 + $0x44] ss:$16 sps:$4 sm:$0xff]   ;;  %v3127_v52 = vld [vmem:[%s4595_s4 + $0x40] ss:$16 sps:$4 sm:$0xff]   ;;  %v3128_v53 = vld [vmem:[%s4595_s4 + $0x48] ss:$16 sps:$4 sm:$0xff]  }
 0x4d8   : > { %v2083_v55 = vmul.f32 0.5, %v2079_v51 }
 0x4d9   : > { %v2087_v56 = vmul.f32 0.5, %v2080_v54  ;;  %v2092_v59 = vmul.f32 0.5, %v2082_v58 }
 0x4da   : > { %3023 = vtanh.f32 %v2083_v55  ;;  %v3129_v55 = vld [vmem:[%s4595_s4 + $0x64] ss:$16 sps:$4 sm:$0xff]  }
 0x4db   : > { %3025 = vtanh.f32 %v2087_v56  ;;  %v3130_v56 = vld [vmem:[%s4595_s4 + $0x6c] ss:$16 sps:$4 sm:$0xff]  }
 0x4dc   : > { %3027 = vtanh.f32 %v2081_v57 }
 0x4dd   : > { %3029 = vtanh.f32 %v2092_v59  ;;  %v3131_v59 = vld [vmem:[%s4595_s4 + $0x60] ss:$16 sps:$4 sm:$0xff]  }
 0x4e4   : > { %v3024_v60 = vpop.eup %3023 }
 0x4e5   : > { %v3026_v61 = vpop.eup %3025  ;;  %v2085_v18 = vmul.f32 0.5, %v3024_v60  ;;  %v3132_v60 = vld [vmem:[%s4595_s4 + $0x68] ss:$16 sps:$4 sm:$0xff]  }
 0x4e6   : > { %v2089_v19 = vmul.f32 0.5, %v3026_v61  ;;  %v3028_v26 = vpop.eup %3027  ;;  %v3133_v61 = vld [vmem:[%s4595_s4 + $0x84] ss:$16 sps:$4 sm:$0xff]  }
 0x4e7   : > { %v2086_v24 = vadd.f32 0.5, %v2085_v18  ;;  %v3030_v41 = vpop.eup %3029 }
 0x4e8   : > { %v2090_v25 = vadd.f32 0.5, %v2089_v19  ;;  %v2094_v29 = vmul.f32 0.5, %v3030_v41  ;;  %v3135_v19 = vld [vmem:[%s4595_s4 + $0x80] ss:$16 sps:$4 sm:$0xff]   ;;  %v3140_v41 = vld [vmem:[%s4595_s4 + $0xa8] ss:$16 sps:$4 sm:$0xff]  }
 0x4e9   : > { %v2097_v62 = vmul.f32 %v3028_v26, %v2086_v24  ;;  %v3136_v24 = vld [vmem:[%s4595_s4 + $0x88] ss:$16 sps:$4 sm:$0xff]   ;;  %v3137_v26 = vld [vmem:[%s4595_s4 + $0xa4] ss:$16 sps:$4 sm:$0xff]  }
 0x4ea   : > { %v2096_v63 = vmul.f32 %v2090_v25, %v4217_v28  ;;  %v2095_v6 = vadd.f32 0.5, %v2094_v29  ;;  %v3138_v25 = vld [vmem:[%s4595_s4 + $0xac] ss:$16 sps:$4 sm:$0xff]   ;;  %v3141_v29 = vld [vmem:[%s4595_s4 + $0xc4] ss:$16 sps:$4 sm:$0xff]  }
 0x4ec   : > { %v4439_v0 = vadd.f32 %v2097_v62, %v2096_v63  ;;  %v3139_v63 = vld [vmem:[%s4595_s4 + $0xa0] ss:$16 sps:$4 sm:$0xff]  }
 0x4ee   : > { %3031 = vtanh.f32 %v4439_v0 }
 0x4f3   : > { %v2142_v20 = vpop.f32.mrb[36].mxu0  ;;  %v2183_v5 = vpop.f32.mrb[52].mxu1 }
 0x4f4   : > { %v2190_v2 = vadd.f32 %v2142_v20, %v4891_v1  ;;  %v2192_v34 = vadd.f32 %v2183_v5, %v4892_v37  ;;  %v2144_v4 = vpop.f32.mrb[37].mxu0  ;;  %v2185_v12 = vpop.f32.mrb[53].mxu1  ;;  %v3142_v20 = vld [vmem:[%s4595_s4 + $0xcc] ss:$16 sps:$4 sm:$0xff]   ;;  %v3144_v37 = vld [vmem:[%s4595_s4 + $0xc8] ss:$16 sps:$4 sm:$0xff]  }
 0x4f5   : > { %v2191_v14 = vadd.f32 %v2144_v4, %v4893_v3  ;;  %v2193_v40 = vadd.f32 %v2185_v12, %v4894_v15  ;;  %v2146_v42 = vpop.f32.mrb[38].mxu0  ;;  %v2187_v28 = vpop.f32.mrb[54].mxu1  ;;  %v3145_v4 = vld [vmem:[%s4595_s4 + $0xe4] ss:$16 sps:$4 sm:$0xff]   ;;  %v3146_v12 = vld [vmem:[%s4595_s4 + $0xec] ss:$16 sps:$4 sm:$0xff]  }
 0x4f6   : > { %v2194_v16 = vmul.f32 0.5, %v2190_v2  ;;  %v2147_v17 = vpop.f32.mrb[39].mxu0  ;;  %v2188_v21 = vpop.f32.mrb[55].mxu1  ;;  %v3143_v2 = vld [vmem:[%s4595_s4 + $0xc0] ss:$16 sps:$4 sm:$0xff]  }
 0x4f7   : > { %v2198_v8 = vmul.f32 0.5, %v2191_v14  ;;  %v2203_v27 = vmul.f32 0.5, %v2193_v40  ;;  %v3147_v14 = vld [vmem:[%s4595_s4 + $0xe0] ss:$16 sps:$4 sm:$0xff]   ;;  %v3148_v15 = vld [vmem:[%s4595_s4 + $0xe8] ss:$16 sps:$4 sm:$0xff]  }
 0x4f8   : > { %v3032_v9 = vpop.eup %3031  ;;  %3033 = vtanh.f32 %v2194_v16  ;;  %v4895_v40 = vld [vmem:[#allocation10_spill] sm:$0xff]  ;;  %v2965_v28 = vld [vmem:[%s4598_s7] sm:$0xff]   ;;  %v2966_v16 = vld [vmem:[%s4598_s7 + $0x8] sm:$0xff]  }
 0x4f9   : > { %v4446_v10 = vmul.f32 %v3032_v9, %v2095_v6  ;;  %3035 = vtanh.f32 %v2198_v8  ;;  %v2410_v42 = vpack.c.bf16 %v4224_v23, %v4895_v40  ;;  %v2967_v17 = vld [vmem:[%s4598_s7 + $0x10] sm:$0xff]   ;;  %v2968_v23 = vld [vmem:[%s4598_s7 + $0x18] sm:$0xff]   ;;  %v2969_v21 = vld [vmem:[%s4598_s7 + $0x20] sm:$0xff]  }
 0x4fa   : > { %3037 = vtanh.f32 %v2192_v34  ;;  %v2970_v6 = vld [vmem:[%s4598_s7 + $0x28] sm:$0xff]   ;;  %v2971_v8 = vld [vmem:[%s4598_s7 + $0x30] sm:$0xff]   ;;  %v2972_v9 = vld [vmem:[%s4598_s7 + $0x38] sm:$0xff]  }
 0x4fb   : > { %v2213_v11 = vpack.c.bf16 %v4446_v10, %v4446_v10  ;;  %3039 = vtanh.f32 %v2203_v27 }
 0x4fd   : > { %2247 = vmatmul.mubr.bf16.vlgmr.msra.gmra.mrb[40].mxu0 %v2213_v11  ;;  %2288 = vmatmul.mubr.bf16.vlgmr.msra.gmra.mrb[56].mxu1 %v2213_v11 }
 0x4fe   : > { %2297 = vmatpush1.bf16.msra.mxu0 %v3119_v13  ;;  %2338 = vmatpush1.bf16.msra.mxu1 %v3120_v35 }
 0x4ff   : > { %2298 = vmatprep.subr.bf16.mxu0 %v3121_v22  ;;  %2339 = vmatprep.subr.bf16.mxu1 %v3122_v32 }
 0x500   : > { %2328 = vmatprep.mubr.bf16.mxu0 %v4751_v45  ;;  %2369 = vmatprep.mubr.bf16.mxu1 %v4751_v45  ;;  %v3126_v45 = vld [vmem:[%s4595_s4 + $0x4c] ss:$16 sps:$4 sm:$0xff]  }
 0x502   : > { %v3034_v43 = vpop.eup %3033  ;;  %2299 = vmatpush1.bf16.msra.mxu0 %v3123_v33  ;;  %2340 = vmatpush1.bf16.msra.mxu1 %v3124_v44 }
 0x503   : > { %v3036_v39 = vpop.eup %3035  ;;  %v2196_v38 = vmul.f32 0.5, %v3034_v43  ;;  %2300 = vmatprep.subr.bf16.mxu0 %v3125_v36  ;;  %2341 = vmatprep.subr.bf16.mxu1 %v3126_v45 }
 0x504   : > { %v2200_v30 = vmul.f32 0.5, %v3036_v39  ;;  %v3038_v50 = vpop.eup %3037 }
 0x505   : > { %v2197_v48 = vadd.f32 0.5, %v2196_v38  ;;  %v3040_v18 = vpop.eup %3039 }
 0x506   : > { %v2201_v51 = vadd.f32 0.5, %v2200_v30  ;;  %2301 = vmatpush1.bf16.msra.mxu0 %v3127_v52  ;;  %2342 = vmatpush1.bf16.msra.mxu1 %v3128_v53  ;;  %v2205_v62 = vmul.f32 0.5, %v3040_v18 }
 0x507   : > { %v2208_v54 = vmul.f32 %v3038_v50, %v2197_v48  ;;  %2302 = vmatprep.subr.bf16.mxu0 %v3129_v55  ;;  %2343 = vmatprep.subr.bf16.mxu1 %v3130_v56 }
 0x508   : > { %v2207_v57 = vmul.f32 %v2201_v51, %v4243_v7  ;;  %v3134_v7 = vld [vmem:[%s4595_s4 + $0x8c] ss:$16 sps:$4 sm:$0xff]   ;;  %v2206_v5 = vadd.f32 0.5, %v2205_v62 }
 0x50a   : > { %v2209_v58 = vadd.f32 %v2208_v54, %v2207_v57  ;;  %2303 = vmatpush1.bf16.msra.mxu0 %v3131_v59  ;;  %2344 = vmatpush1.bf16.msra.mxu1 %v3132_v60 }
 0x50b   : > { %2304 = vmatprep.subr.bf16.mxu0 %v3133_v61  ;;  %2345 = vmatprep.subr.bf16.mxu1 %v3134_v7 }
 0x50c   : > { %3041 = vtanh.f32 %v2209_v58  ;;  %2403 = vst [vmem:[#allocation5] sm:$0xff] %v2209_v58 }
 0x50e   : > { %2305 = vmatpush1.bf16.msra.mxu0 %v3135_v19  ;;  %2346 = vmatpush1.bf16.msra.mxu1 %v3136_v24 }
 0x50f   : > { %2306 = vmatprep.subr.bf16.mxu0 %v3137_v26  ;;  %2347 = vmatprep.subr.bf16.mxu1 %v3138_v25 }
 0x512   : > { %2307 = vmatpush1.bf16.msra.mxu0 %v3139_v63  ;;  %2348 = vmatpush1.bf16.msra.mxu1 %v3140_v41 }
 0x513   : > { %2308 = vmatprep.subr.bf16.mxu0 %v3141_v29  ;;  %2349 = vmatprep.subr.bf16.mxu1 %v3142_v20 }
 0x516   : > { %v3042_v1 = vpop.eup %3041  ;;  %2309 = vmatpush1.bf16.msra.mxu0 %v3143_v2  ;;  %2350 = vmatpush1.bf16.msra.mxu1 %v3144_v37 }
 0x517   : > { %v2211_v34 = vmul.f32 %v3042_v1, %v2206_v5  ;;  %2310 = vmatprep.subr.bf16.mxu0 %v3145_v4  ;;  %2351 = vmatprep.subr.bf16.mxu1 %v3146_v12 }
 0x519   : > { %2402 = vst [vmem:[#allocation4] sm:$0xff] %v2211_v34  ;;  %v2212_v3 = vpack.c.bf16 %v2211_v34, %v2211_v34 }
 0x51a   : > { %2311 = vmatpush1.bf16.msra.mxu0 %v3147_v14  ;;  %2352 = vmatpush1.bf16.msra.mxu1 %v3148_v15 }
 0x51b   : > { %2762 = vmatprep.subr.bf16.mxu0 %v2965_v28 }
 0x51d   : > { %2329 = vmatmul.mubr.bf16.vlgmr.msra.gmra.mrb[44].mxu0 %v2212_v3  ;;  %2370 = vmatmul.mubr.bf16.vlgmr.msra.gmra.mrb[60].mxu1 %v2212_v3 }
 0x51e   : > { %2778 = vmatprep.mubr.bf16.mxu0 %v2410_v42  ;;  %2763 = vmatpush3.bf16.msra.mxu0 %v2965_v28 }
 0x51f   : > { %2764 = vmatprep.subr.bf16.mxu0 %v2966_v16 }
 0x522   : > { %2765 = vmatpush3.bf16.msra.mxu0 %v2966_v16 }
 0x523   : > { %2766 = vmatprep.subr.bf16.mxu0 %v2967_v17 }
 0x526   : > { %2767 = vmatpush3.bf16.msra.mxu0 %v2967_v17 }
 0x527   : > { %2768 = vmatprep.subr.bf16.mxu0 %v2968_v23 }
 0x52a   : > { %2769 = vmatpush3.bf16.msra.mxu0 %v2968_v23 }
 0x52b   : > { %2770 = vmatprep.subr.bf16.mxu0 %v2969_v21 }
 0x52e   : > { %2771 = vmatpush3.bf16.msra.mxu0 %v2969_v21 }
 0x52f   : > { %2772 = vmatprep.subr.bf16.mxu0 %v2970_v6 }
 0x532   : > { %2773 = vmatpush3.bf16.msra.mxu0 %v2970_v6 }
 0x533   : > { %2774 = vmatprep.subr.bf16.mxu0 %v2971_v8 }
 0x536   : > { %2775 = vmatpush3.bf16.msra.mxu0 %v2971_v8 }
 0x537   : > { %2776 = vmatprep.subr.bf16.mxu0 %v2972_v9 }
 0x53a   : > { %2777 = vmatpush3.bf16.msra.mxu0 %v2972_v9 }
 0x5d0   : > { %v2248_v11 = vpop.f32.mrb[40].mxu0  ;;  %v2289_v13 = vpop.f32.mrb[56].mxu1 }
 0x5d1   : > { %v2250_v35 = vpop.f32.mrb[41].mxu0  ;;  %v2291_v22 = vpop.f32.mrb[57].mxu1 }
 0x5d2   : > { %v2252_v32 = vpop.f32.mrb[42].mxu0  ;;  %v2293_v27 = vpop.f32.mrb[58].mxu1 }
 0x5d3   : > { %v2253_v43 = vpop.f32.mrb[43].mxu0  ;;  %v2294_v33 = vpop.f32.mrb[59].mxu1 }
 0x5f0   : > { %v2330_v44 = vpop.f32.mrb[44].mxu0  ;;  %v2371_v39 = vpop.f32.mrb[60].mxu1 }
 0x5f1   : > { %v2331_v38 = vadd.f32 %v2330_v44, %v2248_v11  ;;  %v2372_v36 = vadd.f32 %v2371_v39, %v2289_v13  ;;  %v2332_v45 = vpop.f32.mrb[45].mxu0  ;;  %v2373_v30 = vpop.f32.mrb[61].mxu1 }
 0x5f2   : > { %v2333_v48 = vadd.f32 %v2332_v45, %v2250_v35  ;;  %v2374_v50 = vadd.f32 %v2373_v30, %v2291_v22  ;;  %v2334_v51 = vpop.f32.mrb[46].mxu0  ;;  %v2375_v52 = vpop.f32.mrb[62].mxu1 }
 0x5f3   : > { %v2378_v53 = vadd.f32 %v2331_v38, %v3997_v46  ;;  %v2335_v54 = vpop.f32.mrb[47].mxu0  ;;  %v2376_v55 = vpop.f32.mrb[63].mxu1  ;;  %v2380_v59 = vadd.f32 %v2372_v36, %v4006_v47 }
 0x5f4   : > { %v2379_v56 = vadd.f32 %v2333_v48, %v4001_v49  ;;  %v2381_v60 = vadd.f32 %v2374_v50, %v4012_v31 }
 0x5f5   : > { %v2382_v57 = vmul.f32 0.5, %v2378_v53 }
 0x5f6   : > { %v2386_v58 = vmul.f32 0.5, %v2379_v56  ;;  %v2391_v61 = vmul.f32 0.5, %v2381_v60 }
 0x5f7   : > { %3043 = vtanh.f32 %v2382_v57 }
 0x5f8   : > { %3045 = vtanh.f32 %v2386_v58 }
 0x5f9   : > { %3047 = vtanh.f32 %v2380_v59 }
 0x5fa   : > { %3049 = vtanh.f32 %v2391_v61 }
 0x601   : > { %v3044_v7 = vpop.eup %3043 }
 0x602   : > { %v3046_v18 = vpop.eup %3045  ;;  %v2384_v19 = vmul.f32 0.5, %v3044_v7 }
 0x603   : > { %v2388_v24 = vmul.f32 0.5, %v3046_v18  ;;  %v3048_v26 = vpop.eup %3047 }
 0x604   : > { %v2385_v46 = vadd.f32 0.5, %v2384_v19  ;;  %v3050_v47 = vpop.eup %3049 }
 0x605   : > { %v2389_v25 = vadd.f32 0.5, %v2388_v24  ;;  %v2393_v41 = vmul.f32 0.5, %v3050_v47 }
 0x606   : > { %v2396_v62 = vmul.f32 %v3048_v26, %v2385_v46 }
 0x607   : > { %v2395_v49 = vmul.f32 %v2389_v25, %v4439_v0  ;;  %v2394_v29 = vadd.f32 0.5, %v2393_v41  ;;  %v2740_v0 = vld [vmem:[%s4599_s8] ss:$0 sm:$0xff] }
 0x609   : > { %v2397_v63 = vadd.f32 %v2396_v62, %v2395_v49 }
 0x60b   : > { %3051 = vtanh.f32 %v2397_v63  ;;  %2405 = vst [vmem:[#allocation7] sm:$0xff] %v2397_v63 }
 0x615   : > { %v3052_v31 = vpop.eup %3051 }
 0x616   : > { %v2399_v20 = vmul.f32 %v3052_v31, %v2394_v29 }
 0x618   : > { %2404 = vst [vmem:[#allocation6] sm:$0xff] %v2399_v20  ;;  %v2411_v5 = vpack.c.bf16 %v2399_v20, %v4446_v10 }
 0x61a   : > { %2779 = vmatmul.mubr.bf16.vlgmr.msra.gmra.mrb[48].mxu0 %v2411_v5 }
 0x6ed   : > { %v2780_v1 = vpop.f32.mrb[48].mxu0 }
 0x6ee   : > { %v2517_v2 = vpop.f32.mrb[49].mxu0  ;;  %v2526_v3 = vadd.f32 %v2780_v1, %v2740_v0 }
 0x6ef   : > { %v2518_v37 = vadd.f32 %v2740_v0, %v2517_v2  ;;  %v2781_v34 = vpop.f32.mrb[50].mxu0 }
 0x6f0   : > { %v2520_v4 = vpop.f32.mrb[51].mxu0  ;;  %v2529_v14 = vadd.f32 %v2781_v34, %v2740_v0  ;;  %2534 = vst [vmem:[%s3250_s22 + $0x10] sm:$0xff] %v2526_v3 }
 0x6f1   : > { %2532 = vst [vmem:[%s3250_s22] sm:$0xff] %v2518_v37  ;;  %v2521_v12 = vadd.f32 %v2740_v0, %v2520_v4 }
 0x6f2   : > { %2535 = vst [vmem:[%s3250_s22 + $0x18] sm:$0xff] %v2529_v14 }
 0x6f3   : > { %2533 = vst [vmem:[%s3250_s22 + $0x8] sm:$0xff] %v2521_v12 }
 0x6f4 PF: > { %s19_s11 = sadd.s32 1, %s3171_s11   ;;  %s4896_s30 = smov %s3167_s10 }
 0x6f5   : > { %p16_p7 = scmp.ge.s32.totalorder %s19_s11, 4   ;;  %s4897_s10 = smov %s4899_s12 }
 0x6f7   :  { %18 = sbr.rel (!%p16_p7) target bundleno = 2 (0x2), region = 96 }

</bundles_post_ra>
